<compile_context>
chip_gen: v7x
topology: tpu7x:2x2x1
jax: 0.10.0
libtpu: 0.0.40
codegen_flags: <defaults>
</compile_context>

<pallas_src>
import jax
import jax.numpy as jnp
from jax.experimental import pallas as pl
from jax.experimental.pallas import tpu as pltpu

BN_EPS = 1e-5
LANE = 128  # pad Cout to a full lane width (MXU-native N dim + unmasked lane-dense stores)


def convblock_kernel(xw_ref, w_ref, gamma_ref, beta_ref, o_ref):
    """Fused 3x3 conv (3 K-folded MXU matmuls) + BatchNorm(batch stats) + ReLU.

    xw_ref    : (N, H+2, W, 3*Cin) bf16  kw-folded, replicate-padded NHWC input
                                         xw[n, hp, w, kw*Cin+ci] = xpad[n, hp, w+kw, ci]
    w_ref     : (3, 3*Cin, LANE)   bf16  conv weights, taps folded into K, Cout zero-padded
    gamma_ref : (1, LANE)          f32
    beta_ref  : (1, LANE)          f32
    o_ref     : (M, LANE)          f32   M = N*H*W, lane-dense output
    """
    N, Hp, W, K = xw_ref.shape
    H = Hp - 2
    M = N * H * W

    # ---- conv: 3 back-to-back bf16 matmuls (K = 3*Cin), value accumulation in f32 ----
    y = None
    for kh in range(3):
        # kh slice is on a leading (untiled) dim; the reshape only merges leading dims
        # into whole sublane tiles -> no relayout, no per-tap cast.
        slab = xw_ref[:, kh:kh + H, :, :].reshape(M, K)              # (M, 3*Cin) bf16
        part = jnp.dot(slab, w_ref[kh], preferred_element_type=jnp.float32)
        y = part if y is None else y + part                          # (M, LANE) f32

    # ---- BatchNorm2d (training-mode batch stats): one traversal of the resident y ----
    inv_m = 1.0 / float(M)
    s1 = jnp.sum(y, axis=0, keepdims=True)                           # (1, LANE)
    s2 = jnp.sum(y * y, axis=0, keepdims=True)                       # (1, LANE)
    mean = s1 * inv_m
    var = jnp.maximum(s2 * inv_m - mean * mean, 0.0)                 # biased variance
    inv = jax.lax.rsqrt(var + BN_EPS)

    # fold BN affine into one per-channel scale/shift: y*a + b
    a = gamma_ref[...] * inv
    b = beta_ref[...] - mean * a

    # ---- scale/shift + ReLU, single lane-dense store ----
    o_ref[...] = jnp.maximum(y * a + b, 0.0)


def conv_block_forward_nhwc(x_nhwc, w_oihw, gamma, beta):
    """NHWC-native ConvBlock forward. x_nhwc: (N,H,W,Cin) f32; w_oihw: (Cout,Cin,3,3)."""
    N, H, W, Cin = x_nhwc.shape
    Cout = w_oihw.shape[0]
    M = N * H * W
    K = 3 * Cin

    # replicate pad H/W, then fold the 3 kw taps into the channel axis and cast to bf16 once
    xp = jnp.pad(x_nhwc, ((0, 0), (1, 1), (1, 1), (0, 0)), mode="edge")
    xw = jnp.concatenate([xp[:, :, kw:kw + W, :] for kw in range(3)], axis=-1)
    xw = xw.astype(jnp.bfloat16)                                      # (N, H+2, W, 3*Cin)

    # (Cout, Cin, 3, 3) -> (kh, kw*Cin+ci, co); zero-pad Cout -> LANE; bf16
    w_t = jnp.transpose(w_oihw, (2, 3, 1, 0)).astype(jnp.float32).reshape(3, K, Cout)
    w_p = jnp.zeros((3, K, LANE), jnp.float32).at[..., :Cout].set(w_t).astype(jnp.bfloat16)

    gamma_p = jnp.ones((1, LANE), jnp.float32).at[0, :Cout].set(gamma.astype(jnp.float32))
    beta_p = jnp.zeros((1, LANE), jnp.float32).at[0, :Cout].set(beta.astype(jnp.float32))

    out_flat = pl.pallas_call(
        convblock_kernel,
        out_shape=jax.ShapeDtypeStruct((M, LANE), jnp.float32),
        grid=(1,),
        in_specs=[
            pl.BlockSpec((N, H + 2, W, K), lambda i: (0, 0, 0, 0)),
            pl.BlockSpec((3, K, LANE), lambda i: (0, 0, 0)),
            pl.BlockSpec((1, LANE), lambda i: (0, 0)),
            pl.BlockSpec((1, LANE), lambda i: (0, 0)),
        ],
        out_specs=pl.BlockSpec((M, LANE), lambda i: (0, 0)),
        compiler_params=pltpu.CompilerParams(
            dimension_semantics=("arbitrary",)),
    )(xw, w_p, gamma_p, beta_p)

    # slice the real channels (padded lanes are zeros post-ReLU) and restore NHWC
    return out_flat[:, :Cout].reshape(N, H, W, Cout)


def conv_block_forward(x_nchw, w_oihw, gamma, beta):
    """NCHW interface matching the PyTorch module. A multi-layer network would keep
    activations NHWC end-to-end and skip both transposes."""
    x = jnp.transpose(x_nchw, (0, 2, 3, 1))                  # NCHW -> NHWC
    out = conv_block_forward_nhwc(x, w_oihw, gamma, beta)
    return jnp.transpose(out, (0, 3, 1, 2))                  # NHWC -> NCHW


def reference_conv_block(x_nchw, w_oihw, gamma, beta):
    """Pure-JAX f32 reference (replicate pad -> 3x3 conv -> BN batch stats -> ReLU)."""
    x = jnp.transpose(x_nchw, (0, 2, 3, 1))
    N, H, W, Cin = x.shape
    xp = jnp.pad(x, ((0, 0), (1, 1), (1, 1), (0, 0)), mode="edge")
    y = jnp.zeros((N, H, W, w_oihw.shape[0]), jnp.float32)
    for kh in range(3):
        for kw in range(3):
            y = y + jnp.einsum("nhwc,oc->nhwo",
                               xp[:, kh:kh + H, kw:kw + W, :], w_oihw[:, :, kh, kw])
    mean = y.mean(axis=(0, 1, 2))
    var = y.var(axis=(0, 1, 2))                              # biased, like torch BN training
    yn = (y - mean) * jax.lax.rsqrt(var + BN_EPS) * gamma + beta
    out = jnp.maximum(yn, 0.0)
    return jnp.transpose(out, (0, 3, 1, 2))


if __name__ == "__main__":
    # small shapes consistent with the module: batch=2, inplane=4, outplane=8, spatial=16
    N, Cin, Cout, H, W = 2, 4, 8, 16, 16

    key = jax.random.PRNGKey(0)
    kx, kw = jax.random.split(key)

    x = jax.random.normal(kx, (N, Cin, H, W), dtype=jnp.float32)

    # deterministic parameter init (Conv2d kaiming-like scale; BN default gamma=1, beta=0)
    fan_in = Cin * 3 * 3
    w = jax.random.normal(kw, (Cout, Cin, 3, 3), dtype=jnp.float32) * (1.0 / jnp.sqrt(fan_in))
    gamma = jnp.ones((Cout,), dtype=jnp.float32)
    beta = jnp.zeros((Cout,), dtype=jnp.float32)

    out = conv_block_forward(x, w, gamma, beta)
    jax.block_until_ready(out)

    assert out.shape == (N, Cout, H, W)
    assert bool(jnp.isfinite(out).all())

    # loose tolerance: kernel matmuls run with bf16 operands (f32 accumulation)
    ref = reference_conv_block(x, w, gamma, beta)
    assert bool(jnp.allclose(out, ref, atol=5e-2, rtol=5e-2))

    print("KERNEL_OK")
</pallas_src>

<mosaic_0001>
module attributes {stable_mosaic.version = 11 : i64} {
  func.func @convblock_kernel(%arg0: i32, %arg1: memref<2x18x16x12xbf16, #tpu.memory_space<vmem>>, %arg2: memref<3x12x128xbf16, #tpu.memory_space<vmem>>, %arg3: memref<1x128xf32, #tpu.memory_space<vmem>>, %arg4: memref<1x128xf32, #tpu.memory_space<vmem>>, %arg5: memref<512x128xf32, #tpu.memory_space<vmem>>) attributes {dimension_semantics = [#tpu.dimension_semantics<arbitrary>], iteration_bounds = array<i64: 1>, scalar_prefetch = 0 : i64, scratch_operands = 0 : i64, tpu.core_type = #tpu.core_type<tc>, window_params = [{pipeline_mode = #tpu.pipeline_mode<synchronous>, transform_indices = @transform_0, window_bounds = array<i64: 2, 18, 16, 12>}, {pipeline_mode = #tpu.pipeline_mode<synchronous>, transform_indices = @transform_1, window_bounds = array<i64: 3, 12, 128>}, {pipeline_mode = #tpu.pipeline_mode<synchronous>, transform_indices = @transform_2, window_bounds = array<i64: 1, 128>}, {pipeline_mode = #tpu.pipeline_mode<synchronous>, transform_indices = @transform_3, window_bounds = array<i64: 1, 128>}, {pipeline_mode = #tpu.pipeline_mode<synchronous>, transform_indices = @transform_4, window_bounds = array<i64: 512, 128>}]} {
    %c0 = arith.constant 0 : index
    %c0_0 = arith.constant 0 : index
    %c0_1 = arith.constant 0 : index
    %c0_2 = arith.constant 0 : index
    %0 = vector.load %arg1[%c0, %c0_0, %c0_1, %c0_2] : memref<2x18x16x12xbf16, #tpu.memory_space<vmem>>, vector<2x16x16x12xbf16>
    %1 = vector.shape_cast %0 : vector<2x16x16x12xbf16> to vector<512x12xbf16>
    %c0_3 = arith.constant 0 : index
    %c0_4 = arith.constant 0 : index
    %c0_5 = arith.constant 0 : index
    %2 = vector.load %arg2[%c0_3, %c0_4, %c0_5] : memref<3x12x128xbf16, #tpu.memory_space<vmem>>, vector<1x12x128xbf16>
    %3 = vector.shape_cast %2 : vector<1x12x128xbf16> to vector<12x128xbf16>
    %cst = arith.constant dense<0.000000e+00> : vector<512x128xf32>
    %4 = tpu.matmul %1, %3, %cst {dimension_numbers = #tpu.dot_dimension_numbers<[1], [0], [0], [1], [0, 0, 1, 1], [], []>} : vector<512x12xbf16>, vector<12x128xbf16>, vector<512x128xf32> -> vector<512x128xf32>
    %c0_6 = arith.constant 0 : index
    %c1 = arith.constant 1 : index
    %c0_7 = arith.constant 0 : index
    %c0_8 = arith.constant 0 : index
    %5 = vector.load %arg1[%c0_6, %c1, %c0_7, %c0_8] : memref<2x18x16x12xbf16, #tpu.memory_space<vmem>>, vector<2x16x16x12xbf16>
    %6 = vector.shape_cast %5 : vector<2x16x16x12xbf16> to vector<512x12xbf16>
    %c1_9 = arith.constant 1 : index
    %c0_10 = arith.constant 0 : index
    %c0_11 = arith.constant 0 : index
    %7 = vector.load %arg2[%c1_9, %c0_10, %c0_11] : memref<3x12x128xbf16, #tpu.memory_space<vmem>>, vector<1x12x128xbf16>
    %8 = vector.shape_cast %7 : vector<1x12x128xbf16> to vector<12x128xbf16>
    %cst_12 = arith.constant dense<0.000000e+00> : vector<512x128xf32>
    %9 = tpu.matmul %6, %8, %cst_12 {dimension_numbers = #tpu.dot_dimension_numbers<[1], [0], [0], [1], [0, 0, 1, 1], [], []>} : vector<512x12xbf16>, vector<12x128xbf16>, vector<512x128xf32> -> vector<512x128xf32>
    %10 = arith.addf %4, %9 : vector<512x128xf32>
    %c0_13 = arith.constant 0 : index
    %c2 = arith.constant 2 : index
    %c0_14 = arith.constant 0 : index
    %c0_15 = arith.constant 0 : index
    %11 = vector.load %arg1[%c0_13, %c2, %c0_14, %c0_15] : memref<2x18x16x12xbf16, #tpu.memory_space<vmem>>, vector<2x16x16x12xbf16>
    %12 = vector.shape_cast %11 : vector<2x16x16x12xbf16> to vector<512x12xbf16>
    %c2_16 = arith.constant 2 : index
    %c0_17 = arith.constant 0 : index
    %c0_18 = arith.constant 0 : index
    %13 = vector.load %arg2[%c2_16, %c0_17, %c0_18] : memref<3x12x128xbf16, #tpu.memory_space<vmem>>, vector<1x12x128xbf16>
    %14 = vector.shape_cast %13 : vector<1x12x128xbf16> to vector<12x128xbf16>
    %cst_19 = arith.constant dense<0.000000e+00> : vector<512x128xf32>
    %15 = tpu.matmul %12, %14, %cst_19 {dimension_numbers = #tpu.dot_dimension_numbers<[1], [0], [0], [1], [0, 0, 1, 1], [], []>} : vector<512x12xbf16>, vector<12x128xbf16>, vector<512x128xf32> -> vector<512x128xf32>
    %16 = arith.addf %10, %15 : vector<512x128xf32>
    %cst_20 = arith.constant dense<0.000000e+00> : vector<128xf32>
    %17 = vector.multi_reduction <add>, %16, %cst_20 [0] : vector<512x128xf32> to vector<128xf32>
    %18 = vector.shape_cast %17 : vector<128xf32> to vector<1x128xf32>
    %19 = arith.mulf %16, %16 : vector<512x128xf32>
    %cst_21 = arith.constant dense<0.000000e+00> : vector<128xf32>
    %20 = vector.multi_reduction <add>, %19, %cst_21 [0] : vector<512x128xf32> to vector<128xf32>
    %21 = vector.shape_cast %20 : vector<128xf32> to vector<1x128xf32>
    %cst_22 = arith.constant 0.001953125 : f32
    %22 = vector.broadcast %cst_22 : f32 to vector<1x128xf32>
    %23 = arith.mulf %18, %22 : vector<1x128xf32>
    %cst_23 = arith.constant 0.001953125 : f32
    %24 = vector.broadcast %cst_23 : f32 to vector<1x128xf32>
    %25 = arith.mulf %21, %24 : vector<1x128xf32>
    %26 = arith.mulf %23, %23 : vector<1x128xf32>
    %27 = arith.subf %25, %26 : vector<1x128xf32>
    %cst_24 = arith.constant 0.000000e+00 : f32
    %28 = vector.broadcast %cst_24 : f32 to vector<1x128xf32>
    %29 = arith.maximumf %27, %28 : vector<1x128xf32>
    %cst_25 = arith.constant 9.99999974E-6 : f32
    %30 = vector.broadcast %cst_25 : f32 to vector<1x128xf32>
    %31 = arith.addf %29, %30 : vector<1x128xf32>
    %32 = math.rsqrt %31 : vector<1x128xf32>
    %c0_26 = arith.constant 0 : index
    %c0_27 = arith.constant 0 : index
    %33 = vector.load %arg3[%c0_26, %c0_27] : memref<1x128xf32, #tpu.memory_space<vmem>>, vector<1x128xf32>
    %34 = arith.mulf %33, %32 : vector<1x128xf32>
    %c0_28 = arith.constant 0 : index
    %c0_29 = arith.constant 0 : index
    %35 = vector.load %arg4[%c0_28, %c0_29] : memref<1x128xf32, #tpu.memory_space<vmem>>, vector<1x128xf32>
    %36 = arith.mulf %23, %34 : vector<1x128xf32>
    %37 = arith.subf %35, %36 : vector<1x128xf32>
    %38 = vector.broadcast %34 : vector<1x128xf32> to vector<512x128xf32>
    %39 = arith.mulf %16, %38 : vector<512x128xf32>
    %40 = vector.broadcast %37 : vector<1x128xf32> to vector<512x128xf32>
    %41 = arith.addf %39, %40 : vector<512x128xf32>
    %cst_30 = arith.constant 0.000000e+00 : f32
    %42 = vector.broadcast %cst_30 : f32 to vector<512x128xf32>
    %43 = arith.maximumf %41, %42 : vector<512x128xf32>
    %c0_31 = arith.constant 0 : index
    %c0_32 = arith.constant 0 : index
    %44 = vector.load %arg5[%c0_31, %c0_32] : memref<512x128xf32, #tpu.memory_space<vmem>>, vector<512x128xf32>
    tpu.vector_store %arg5[%c0_31, %c0_32], %43 {strides = array<i32>} : memref<512x128xf32, #tpu.memory_space<vmem>>, vector<512x128xf32>,
    return
  }
  func.func @transform_0(%arg0: i32) -> (i32, i32, i32, i32) {
    %c0_i32 = arith.constant 0 : i32
    %c0_i32_0 = arith.constant 0 : i32
    %c0_i32_1 = arith.constant 0 : i32
    %c0_i32_2 = arith.constant 0 : i32
    %c0_i32_3 = arith.constant 0 : i32
    return %c0_i32, %c0_i32_0, %c0_i32_1, %c0_i32_2 : i32, i32, i32, i32
  }
  func.func @transform_1(%arg0: i32) -> (i32, i32, i32) {
    %c0_i32 = arith.constant 0 : i32
    %c0_i32_0 = arith.constant 0 : i32
    %c0_i32_1 = arith.constant 0 : i32
    %c0_i32_2 = arith.constant 0 : i32
    return %c0_i32, %c0_i32_0, %c0_i32_1 : i32, i32, i32
  }
  func.func @transform_2(%arg0: i32) -> (i32, i32) {
    %c0_i32 = arith.constant 0 : i32
    %c0_i32_0 = arith.constant 0 : i32
    %c0_i32_1 = arith.constant 0 : i32
    return %c0_i32, %c0_i32_0 : i32, i32
  }
  func.func @transform_3(%arg0: i32) -> (i32, i32) {
    %c0_i32 = arith.constant 0 : i32
    %c0_i32_0 = arith.constant 0 : i32
    %c0_i32_1 = arith.constant 0 : i32
    return %c0_i32, %c0_i32_0 : i32, i32
  }
  func.func @transform_4(%arg0: i32) -> (i32, i32) {
    %c0_i32 = arith.constant 0 : i32
    %c0_i32_0 = arith.constant 0 : i32
    %c0_i32_1 = arith.constant 0 : i32
    return %c0_i32, %c0_i32_0 : i32, i32
  }
}

</mosaic_0001>

<bundles_post_ra>
// kernel: tpu_custom_call.1
= control target key start
LH: loop header
LB: loop body
LE: loop exit
PB: predicated region body
PF: predicated region fallthrough
CT: control target
= control target key end

     0   :  { %vm415_vm0 = vcmask 1045504   ;;  %vm318_vm1 = vcmask 97280   ;;  %s4737_s0 = inlined_call_operand.vmem [shape: bf16[2,18,16,12], index: 0, kind: input, shape index: {}]   ;;  %s4738_s1 = inlined_call_operand.vmem [shape: bf16[3,12,128], index: 1, kind: input, shape index: {}]   ;;  %s4739_s2 = inlined_call_operand.vmem [shape: f32[1,128], index: 2, kind: input, shape index: {}]   ;;  %s4740_s3 = inlined_call_operand.vmem [shape: f32[1,128], index: 3, kind: input, shape index: {}]   ;;  %s4741_s4 = inlined_call_operand.hbm [shape: f32[512,128], index: 4, kind: output, shape index: {}]  }
   0x1   :  { %v3205_v0 = vld [vmem:[%s4738_s1 + $0x8] sm:$0x3f]   ;;  %v3206_v2 = vld [vmem:[%s4738_s1] sm:$0x3f]   ;;  %v3209_v6 = vld [vmem:[%s4737_s0 + $0x10] sm:$0xff]  }
   0x2   :  { %v3207_v1 = vld [vmem:[%s4737_s0 + $0x8] sm:$0xff]   ;;  %3198 = vmatprep.subr.msk.bf16.mxu1 %vm415_vm0, %v3205_v0  ;;  %v417_v3 = vsel %vm415_vm0, %v3205_v0, 0  ;;  %3199 = vmatprep.subr.msk.bf16.mxu0 %vm415_vm0, %v3206_v2  ;;  %v970_v4 = vsel %vm415_vm0, %v3206_v2, 0  ;;  %v3208_v5 = vld [vmem:[%s4737_s0] sm:$0xff]   ;;  %v3211_v8 = vld [vmem:[%s4738_s1 + $0x10] sm:$0x3f]  }
   0x3   :  { %2871 = vmatpush3.bf16.msra.mxu1 %v417_v3  ;;  %2872 = vmatprep.mubr.msk.bf16.mxu1 %vm318_vm1, %v3207_v1  ;;  %v3210_v7 = vld [vmem:[%s4737_s0 + $0x8] sm:$0xff]   ;;  %v3212_v9 = vld [vmem:[%s4737_s0 + $0x18] sm:$0xff]   ;;  %v1591_v10 = vsel %vm415_vm0, %v3211_v8, 0  ;;  %v3213_v11 = vld [vmem:[%s4737_s0 + $0x10] sm:$0xff]  }
   0x4   :  { %3200 = vmatprep.subr.msk.bf16.mxu1 %vm415_vm0, %v3206_v2  ;;  %2937 = vmatpush3.bf16.msra.mxu0 %v970_v4  ;;  %v3214_v12 = vld [vmem:[%s4737_s0 + $0x20] sm:$0xff]   ;;  %v3215_v13 = vld [vmem:[%s4737_s0 + $0x18] sm:$0xff]   ;;  %v3216_v14 = vld [vmem:[%s4737_s0 + $0x28] sm:$0xff]  }
   0x5   :  { %2938 = vmatprep.mubr.msk.bf16.mxu0 %vm318_vm1, %v3208_v5  ;;  %3201 = vmatprep.subr.msk.bf16.mxu0 %vm415_vm0, %v3211_v8  ;;  %v3217_v15 = vld [vmem:[%s4737_s0 + $0x20] sm:$0xff]   ;;  %v3218_v16 = vld [vmem:[%s4737_s0 + $0x30] sm:$0xff]   ;;  %v3219_v17 = vld [vmem:[%s4737_s0 + $0x28] sm:$0xff]  }
   0x6   :  { %2873 = vmatmul.mubr.msk.bf16.vlgmr.msra.gmra.mrb[0].mxu1 %vm318_vm1, %v3209_v6  ;;  %v3220_v18 = vld [vmem:[%s4737_s0 + $0x38] sm:$0xff]   ;;  %v3221_v19 = vld [vmem:[%s4737_s0 + $0x30] sm:$0xff]   ;;  %v3222_v20 = vld [vmem:[%s4737_s0 + $0x40] sm:$0xff]  }
   0x7   :  { %2939 = vmatmul.mubr.msk.bf16.vlgmr.msra.gmra.mrb[0].mxu0 %vm318_vm1, %v3210_v7  ;;  %3069 = vmatpush3.bf16.msra.mxu1 %v970_v4  ;;  %v3223_v21 = vld [vmem:[%s4737_s0 + $0x38] sm:$0xff]   ;;  %v3224_v22 = vld [vmem:[%s4737_s0 + $0x48] sm:$0xff]   ;;  %v3225_v23 = vld [vmem:[%s4737_s0 + $0x40] sm:$0xff]  }
   0x8   :  { %3003 = vmatpush3.bf16.msra.mxu0 %v1591_v10  ;;  %2876 = vmatprep.mubr.msk.bf16.mxu1 %vm318_vm1, %v3212_v9  ;;  %v3226_v24 = vld [vmem:[%s4737_s0 + $0x50] sm:$0xff]   ;;  %v3227_v25 = vld [vmem:[%s4737_s0 + $0x48] sm:$0xff]   ;;  %v3228_v26 = vld [vmem:[%s4737_s0 + $0x58] sm:$0xff]  }
   0x9   :  { %2942 = vmatprep.mubr.msk.bf16.mxu0 %vm318_vm1, %v3213_v11  ;;  %v3229_v27 = vld [vmem:[%s4737_s0 + $0x50] sm:$0xff]   ;;  %v3230_v28 = vld [vmem:[%s4737_s0 + $0x60] sm:$0xff]   ;;  %v3231_v29 = vld [vmem:[%s4737_s0 + $0x58] sm:$0xff]  }
   0xa   :  { %v3232_v30 = vld [vmem:[%s4737_s0 + $0x68] sm:$0xff]   ;;  %v3233_v31 = vld [vmem:[%s4737_s0 + $0x60] sm:$0xff]   ;;  %v3234_v32 = vld [vmem:[%s4737_s0 + $0x70] sm:$0xff]  }
   0xb   :  { %v3235_v33 = vld [vmem:[%s4737_s0 + $0x68] sm:$0xff]   ;;  %v3236_v34 = vld [vmem:[%s4737_s0 + $0x78] sm:$0xff]   ;;  %v3237_v35 = vld [vmem:[%s4737_s0 + $0x70] sm:$0xff]  }
   0xc   :  { %v3238_v36 = vld [vmem:[%s4737_s0 + $0x80] sm:$0xff]   ;;  %v3239_v37 = vld [vmem:[%s4737_s0 + $0x78] sm:$0xff]   ;;  %v3241_v39 = vld [vmem:[%s4737_s0 + $0x10] sm:$0xff]  }
   0xd   :  { %v3240_v38 = vld [vmem:[%s4737_s0 + $0x98] sm:$0xff]   ;;  %v3242_v40 = vld [vmem:[%s4737_s0 + $0xa0] sm:$0xff]   ;;  %v3244_v42 = vld [vmem:[%s4737_s0 + $0xa8] sm:$0xff]  }
   0xe   :  { %2877 = vmatmul.mubr.msk.bf16.gmra.mrb[4].mxu1 %vm318_vm1, %v3214_v12  ;;  %v3243_v41 = vld [vmem:[%s4737_s0 + $0x18] sm:$0xff]   ;;  %v3245_v43 = vld [vmem:[%s4737_s0 + $0x20] sm:$0xff]   ;;  %v3246_v44 = vld [vmem:[%s4737_s0 + $0xb0] sm:$0xff]  }
   0xf   :  { %2943 = vmatmul.mubr.msk.bf16.gmra.mrb[4].mxu0 %vm318_vm1, %v3215_v13  ;;  %2880 = vmatprep.mubr.msk.bf16.mxu1 %vm318_vm1, %v3216_v14  ;;  %v3247_v45 = vld [vmem:[%s4737_s0 + $0x28] sm:$0xff]   ;;  %v3248_v46 = vld [vmem:[%s4737_s0 + $0xb8] sm:$0xff]   ;;  %v3249_v47 = vld [vmem:[%s4737_s0 + $0x30] sm:$0xff]  }
  0x10   :  { %2946 = vmatprep.mubr.msk.bf16.mxu0 %vm318_vm1, %v3217_v15  ;;  %v3250_v48 = vld [vmem:[%s4737_s0 + $0xc0] sm:$0xff]   ;;  %v3251_v49 = vld [vmem:[%s4737_s0 + $0x38] sm:$0xff]   ;;  %v3252_v50 = vld [vmem:[%s4737_s0 + $0xc8] sm:$0xff]  }
  0x11   :  { %v3253_v51 = vld [vmem:[%s4737_s0 + $0x40] sm:$0xff]   ;;  %v3254_v52 = vld [vmem:[%s4737_s0 + $0xd0] sm:$0xff]   ;;  %v3255_v53 = vld [vmem:[%s4737_s0 + $0x48] sm:$0xff]  }
  0x12   :  { %v3256_v54 = vld [vmem:[%s4737_s0 + $0xd8] sm:$0xff]   ;;  %v3257_v55 = vld [vmem:[%s4737_s0 + $0x50] sm:$0xff]   ;;  %v3258_v56 = vld [vmem:[%s4737_s0 + $0xe0] sm:$0xff]  }
  0x16   :  { %2881 = vmatmul.mubr.msk.bf16.gmra.mrb[8].mxu1 %vm318_vm1, %v3218_v16 }
  0x17   :  { %2947 = vmatmul.mubr.msk.bf16.gmra.mrb[8].mxu0 %vm318_vm1, %v3219_v17  ;;  %2884 = vmatprep.mubr.msk.bf16.mxu1 %vm318_vm1, %v3220_v18 }
  0x18   :  { %2950 = vmatprep.mubr.msk.bf16.mxu0 %vm318_vm1, %v3221_v19 }
  0x1e   :  { %2885 = vmatmul.mubr.msk.bf16.gmra.mrb[12].mxu1 %vm318_vm1, %v3222_v20 }
  0x1f   :  { %2951 = vmatmul.mubr.msk.bf16.gmra.mrb[12].mxu0 %vm318_vm1, %v3223_v21  ;;  %2888 = vmatprep.mubr.msk.bf16.mxu1 %vm318_vm1, %v3224_v22 }
  0x20   :  { %2954 = vmatprep.mubr.msk.bf16.mxu0 %vm318_vm1, %v3225_v23 }
  0x26   :  { %2889 = vmatmul.mubr.msk.bf16.gmra.mrb[16].mxu1 %vm318_vm1, %v3226_v24 }
  0x27   :  { %2955 = vmatmul.mubr.msk.bf16.gmra.mrb[16].mxu0 %vm318_vm1, %v3227_v25  ;;  %2892 = vmatprep.mubr.msk.bf16.mxu1 %vm318_vm1, %v3228_v26 }
  0x28   :  { %2958 = vmatprep.mubr.msk.bf16.mxu0 %vm318_vm1, %v3229_v27 }
  0x2e   :  { %2893 = vmatmul.mubr.msk.bf16.gmra.mrb[20].mxu1 %vm318_vm1, %v3230_v28 }
  0x2f   :  { %2959 = vmatmul.mubr.msk.bf16.gmra.mrb[20].mxu0 %vm318_vm1, %v3231_v29  ;;  %2896 = vmatprep.mubr.msk.bf16.mxu1 %vm318_vm1, %v3232_v30 }
  0x30   :  { %2962 = vmatprep.mubr.msk.bf16.mxu0 %vm318_vm1, %v3233_v31 }
  0x36   :  { %2897 = vmatmul.mubr.msk.bf16.gmra.mrb[24].mxu1 %vm318_vm1, %v3234_v32 }
  0x37   :  { %2963 = vmatmul.mubr.msk.bf16.gmra.mrb[24].mxu0 %vm318_vm1, %v3235_v33  ;;  %2900 = vmatprep.mubr.msk.bf16.mxu1 %vm318_vm1, %v3236_v34 }
  0x38   :  { %2966 = vmatprep.mubr.msk.bf16.mxu0 %vm318_vm1, %v3237_v35 }
  0x3e   :  { %2901 = vmatmul.mubr.msk.bf16.gmra.mrb[28].mxu1 %vm318_vm1, %v3238_v36 }
  0x3f   :  { %2967 = vmatmul.mubr.msk.bf16.gmra.mrb[28].mxu0 %vm318_vm1, %v3239_v37  ;;  %2904 = vmatprep.mubr.msk.bf16.mxu1 %vm318_vm1, %v3240_v38 }
  0x40   :  { %3004 = vmatprep.mubr.msk.bf16.mxu0 %vm318_vm1, %v3241_v39 }
  0x46   :  { %2905 = vmatmul.mubr.msk.bf16.gmra.mrb[32].mxu1 %vm318_vm1, %v3242_v40 }
  0x47   :  { %3005 = vmatmul.mubr.msk.bf16.vlgmr.msra.gmra.mrb[0].mxu0 %vm318_vm1, %v3243_v41  ;;  %2908 = vmatprep.mubr.msk.bf16.mxu1 %vm318_vm1, %v3244_v42 }
  0x48   :  { %3008 = vmatprep.mubr.msk.bf16.mxu0 %vm318_vm1, %v3245_v43 }
  0x4e   :  { %2909 = vmatmul.mubr.msk.bf16.gmra.mrb[36].mxu1 %vm318_vm1, %v3246_v44 }
  0x4f   :  { %3009 = vmatmul.mubr.msk.bf16.gmra.mrb[4].mxu0 %vm318_vm1, %v3247_v45  ;;  %2912 = vmatprep.mubr.msk.bf16.mxu1 %vm318_vm1, %v3248_v46 }
  0x50   :  { %3012 = vmatprep.mubr.msk.bf16.mxu0 %vm318_vm1, %v3249_v47 }
  0x56   :  { %2913 = vmatmul.mubr.msk.bf16.gmra.mrb[40].mxu1 %vm318_vm1, %v3250_v48 }
  0x57   :  { %3013 = vmatmul.mubr.msk.bf16.gmra.mrb[8].mxu0 %vm318_vm1, %v3251_v49  ;;  %2916 = vmatprep.mubr.msk.bf16.mxu1 %vm318_vm1, %v3252_v50 }
  0x58   :  { %3016 = vmatprep.mubr.msk.bf16.mxu0 %vm318_vm1, %v3253_v51 }
  0x5e   :  { %2917 = vmatmul.mubr.msk.bf16.gmra.mrb[44].mxu1 %vm318_vm1, %v3254_v52 }
  0x5f   :  { %3017 = vmatmul.mubr.msk.bf16.gmra.mrb[12].mxu0 %vm318_vm1, %v3255_v53  ;;  %2920 = vmatprep.mubr.msk.bf16.mxu1 %vm318_vm1, %v3256_v54 }
  0x60   :  { %3020 = vmatprep.mubr.msk.bf16.mxu0 %vm318_vm1, %v3257_v55 }
  0x61   :  { %9 = vsyncpa [#allocation3], 0  ;;  %v3259_v57 = vld [vmem:[%s4737_s0 + $0x58] sm:$0xff]   ;;  %v3260_v58 = vld [vmem:[%s4737_s0 + $0xe8] sm:$0xff]  }
  0x62   :  { %v3261_v59 = vld [vmem:[%s4737_s0 + $0x60] sm:$0xff]   ;;  %v3262_v60 = vld [vmem:[%s4737_s0 + $0xf0] sm:$0xff]   ;;  %v3263_v61 = vld [vmem:[%s4737_s0 + $0x68] sm:$0xff]  }
  0x63   :  { %v3264_v62 = vld [vmem:[%s4737_s0 + $0xf8] sm:$0xff]   ;;  %v3265_v63 = vld [vmem:[%s4737_s0 + $0x70] sm:$0xff]   ;;  %v3266_v0 = vld [vmem:[%s4737_s0 + $0x100] sm:$0xff]  }
  0x64   :  { %v3267_v1 = vld [vmem:[%s4737_s0 + $0x78] sm:$0xff]   ;;  %v3268_v2 = vld [vmem:[%s4737_s0 + $0x108] sm:$0xff]   ;;  %v3269_v3 = vld [vmem:[%s4737_s0 + $0x80] sm:$0xff]  }
  0x65   :  { %v3270_v4 = vld [vmem:[%s4737_s0 + $0x110] sm:$0xff]   ;;  %v3271_v5 = vld [vmem:[%s4737_s0 + $0x88] sm:$0xff]   ;;  %v3273_v7 = vld [vmem:[%s4737_s0 + $0xa0] sm:$0xff]  }
  0x66   :  { %2921 = vmatmul.mubr.msk.bf16.gmra.mrb[48].mxu1 %vm318_vm1, %v3258_v56  ;;  %v3272_v6 = vld [vmem:[%s4737_s0 + $0x90] sm:$0xff]   ;;  %v3274_v8 = vld [vmem:[%s4737_s0 + $0x98] sm:$0xff]   ;;  %v3275_v9 = vld [vmem:[%s4737_s0 + $0xa8] sm:$0xff]  }
  0x67   :  { %3021 = vmatmul.mubr.msk.bf16.gmra.mrb[16].mxu0 %vm318_vm1, %v3259_v57  ;;  %2924 = vmatprep.mubr.msk.bf16.mxu1 %vm318_vm1, %v3260_v58  ;;  %v3276_v10 = vld [vmem:[%s4737_s0 + $0xa0] sm:$0xff]   ;;  %v3277_v11 = vld [vmem:[%s4737_s0 + $0xb0] sm:$0xff]   ;;  %v3278_v12 = vld [vmem:[%s4737_s0 + $0xa8] sm:$0xff]  }
  0x68   :  { %3024 = vmatprep.mubr.msk.bf16.mxu0 %vm318_vm1, %v3261_v59  ;;  %v3279_v13 = vld [vmem:[%s4737_s0 + $0xb8] sm:$0xff]   ;;  %v3280_v14 = vld [vmem:[%s4737_s0 + $0xb0] sm:$0xff]   ;;  %v3281_v15 = vld [vmem:[%s4737_s0 + $0xc0] sm:$0xff]  }
  0x69   :  { %v3282_v16 = vld [vmem:[%s4737_s0 + $0xb8] sm:$0xff]   ;;  %v3283_v17 = vld [vmem:[%s4737_s0 + $0xc8] sm:$0xff]   ;;  %v3284_v18 = vld [vmem:[%s4737_s0 + $0xc0] sm:$0xff]  }
  0x6a   :  { %v3285_v19 = vld [vmem:[%s4737_s0 + $0xd0] sm:$0xff]   ;;  %v3286_v20 = vld [vmem:[%s4737_s0 + $0xc8] sm:$0xff]   ;;  %v3287_v21 = vld [vmem:[%s4737_s0 + $0xd8] sm:$0xff]  }
  0x6b   :  { %v3288_v22 = vld [vmem:[%s4737_s0 + $0xd0] sm:$0xff]   ;;  %v3289_v23 = vld [vmem:[%s4737_s0 + $0xe0] sm:$0xff]   ;;  %v3290_v24 = vld [vmem:[%s4737_s0 + $0xd8] sm:$0xff]  }
  0x6c   :  { %v3291_v25 = vld [vmem:[%s4737_s0 + $0xe8] sm:$0xff]   ;;  %v3292_v26 = vld [vmem:[%s4737_s0 + $0xe0] sm:$0xff]   ;;  %v3293_v27 = vld [vmem:[%s4737_s0 + $0xf0] sm:$0xff]  }
  0x6d   :  { %v3294_v28 = vld [vmem:[%s4737_s0 + $0xe8] sm:$0xff]   ;;  %v3295_v29 = vld [vmem:[%s4737_s0 + $0xf8] sm:$0xff]   ;;  %v3296_v30 = vld [vmem:[%s4737_s0 + $0xf0] sm:$0xff]  }
  0x6e   :  { %2925 = vmatmul.mubr.msk.bf16.gmra.mrb[52].mxu1 %vm318_vm1, %v3262_v60  ;;  %v3297_v31 = vld [vmem:[%s4737_s0 + $0x100] sm:$0xff]   ;;  %v3298_v32 = vld [vmem:[%s4737_s0 + $0xf8] sm:$0xff]   ;;  %v3299_v33 = vld [vmem:[%s4737_s0 + $0x108] sm:$0xff]  }
  0x6f   :  { %3025 = vmatmul.mubr.msk.bf16.gmra.mrb[20].mxu0 %vm318_vm1, %v3263_v61  ;;  %2928 = vmatprep.mubr.msk.bf16.mxu1 %vm318_vm1, %v3264_v62  ;;  %v3300_v34 = vld [vmem:[%s4737_s0 + $0x100] sm:$0xff]   ;;  %v3301_v35 = vld [vmem:[%s4737_s0 + $0x110] sm:$0xff]   ;;  %v3302_v36 = vld [vmem:[%s4737_s0 + $0x108] sm:$0xff]  }
  0x70   :  { %3028 = vmatprep.mubr.msk.bf16.mxu0 %vm318_vm1, %v3265_v63  ;;  %v3303_v37 = vld [vmem:[%s4737_s0 + $0x118] sm:$0xff]  }
  0x76   :  { %2929 = vmatmul.mubr.msk.bf16.gmra.mrb[56].mxu1 %vm318_vm1, %v3266_v0 }
  0x77   :  { %3029 = vmatmul.mubr.msk.bf16.gmra.mrb[24].mxu0 %vm318_vm1, %v3267_v1  ;;  %2932 = vmatprep.mubr.msk.bf16.mxu1 %vm318_vm1, %v3268_v2 }
  0x78   :  { %3032 = vmatprep.mubr.msk.bf16.mxu0 %vm318_vm1, %v3269_v3 }
  0x7e   :  { %2933 = vmatmul.mubr.msk.bf16.gmra.mrb[60].mxu1 %vm318_vm1, %v3270_v4 }
  0x7f   :  { %3033 = vmatmul.mubr.msk.bf16.gmra.mrb[28].mxu0 %vm318_vm1, %v3271_v5  ;;  %2970 = vmatprep.mubr.msk.bf16.mxu1 %vm318_vm1, %v3272_v6 }
  0x80   :  { %3036 = vmatprep.mubr.msk.bf16.mxu0 %vm318_vm1, %v3273_v7 }
  0x86   :  { %2971 = vmatmul.mubr.msk.bf16.vlgmr.msra.gmra.mrb[32].mxu1 %vm318_vm1, %v3274_v8 }
  0x87   :  { %3037 = vmatmul.mubr.msk.bf16.gmra.mrb[32].mxu0 %vm318_vm1, %v3275_v9  ;;  %2974 = vmatprep.mubr.msk.bf16.mxu1 %vm318_vm1, %v3276_v10 }
  0x88   :  { %3040 = vmatprep.mubr.msk.bf16.mxu0 %vm318_vm1, %v3277_v11 }
  0x8e   :  { %2975 = vmatmul.mubr.msk.bf16.gmra.mrb[36].mxu1 %vm318_vm1, %v3278_v12 }
  0x8f   :  { %3041 = vmatmul.mubr.msk.bf16.gmra.mrb[36].mxu0 %vm318_vm1, %v3279_v13  ;;  %2978 = vmatprep.mubr.msk.bf16.mxu1 %vm318_vm1, %v3280_v14 }
  0x90   :  { %3044 = vmatprep.mubr.msk.bf16.mxu0 %vm318_vm1, %v3281_v15 }
  0x96   :  { %2979 = vmatmul.mubr.msk.bf16.gmra.mrb[40].mxu1 %vm318_vm1, %v3282_v16 }
  0x97   :  { %3045 = vmatmul.mubr.msk.bf16.gmra.mrb[40].mxu0 %vm318_vm1, %v3283_v17  ;;  %2982 = vmatprep.mubr.msk.bf16.mxu1 %vm318_vm1, %v3284_v18 }
  0x98   :  { %3048 = vmatprep.mubr.msk.bf16.mxu0 %vm318_vm1, %v3285_v19 }
  0x9e   :  { %2983 = vmatmul.mubr.msk.bf16.gmra.mrb[44].mxu1 %vm318_vm1, %v3286_v20 }
  0x9f   :  { %3049 = vmatmul.mubr.msk.bf16.gmra.mrb[44].mxu0 %vm318_vm1, %v3287_v21  ;;  %2986 = vmatprep.mubr.msk.bf16.mxu1 %vm318_vm1, %v3288_v22 }
  0xa0   :  { %3052 = vmatprep.mubr.msk.bf16.mxu0 %vm318_vm1, %v3289_v23 }
  0xa6   :  { %2987 = vmatmul.mubr.msk.bf16.gmra.mrb[48].mxu1 %vm318_vm1, %v3290_v24 }
  0xa7   :  { %3053 = vmatmul.mubr.msk.bf16.gmra.mrb[48].mxu0 %vm318_vm1, %v3291_v25  ;;  %2990 = vmatprep.mubr.msk.bf16.mxu1 %vm318_vm1, %v3292_v26 }
  0xa8   :  { %3056 = vmatprep.mubr.msk.bf16.mxu0 %vm318_vm1, %v3293_v27 }
  0xae   :  { %2991 = vmatmul.mubr.msk.bf16.gmra.mrb[52].mxu1 %vm318_vm1, %v3294_v28 }
  0xaf   :  { %3057 = vmatmul.mubr.msk.bf16.gmra.mrb[52].mxu0 %vm318_vm1, %v3295_v29  ;;  %2994 = vmatprep.mubr.msk.bf16.mxu1 %vm318_vm1, %v3296_v30 }
  0xb0   :  { %3060 = vmatprep.mubr.msk.bf16.mxu0 %vm318_vm1, %v3297_v31 }
  0xb6   :  { %2995 = vmatmul.mubr.msk.bf16.gmra.mrb[56].mxu1 %vm318_vm1, %v3298_v32 }
  0xb7   :  { %3061 = vmatmul.mubr.msk.bf16.gmra.mrb[56].mxu0 %vm318_vm1, %v3299_v33  ;;  %2998 = vmatprep.mubr.msk.bf16.mxu1 %vm318_vm1, %v3300_v34 }
  0xb8   :  { %3064 = vmatprep.mubr.msk.bf16.mxu0 %vm318_vm1, %v3301_v35 }
  0xbe   :  { %2999 = vmatmul.mubr.msk.bf16.gmra.mrb[60].mxu1 %vm318_vm1, %v3302_v36 }
  0xbf   :  { %3065 = vmatmul.mubr.msk.bf16.gmra.mrb[60].mxu0 %vm318_vm1, %v3303_v37 }
  0xd9   :  { %v2874_v38 = vpop.f32.mrb[0].mxu1 }
  0xda   :  { %v453_v39 = vpop.f32.mrb[1].mxu1 }
  0xdb   :  { %v2875_v40 = vpop.f32.mrb[2].mxu1 }
  0xdc   :  { %v456_v41 = vpop.f32.mrb[3].mxu1 }
  0xe1   :  { %v2878_v42 = vpop.f32.mrb[4].mxu1 }
  0xe2   :  { %v469_v43 = vpop.f32.mrb[5].mxu1 }
  0xe3   :  { %v2879_v44 = vpop.f32.mrb[6].mxu1 }
  0xe4   :  { %v472_v45 = vpop.f32.mrb[7].mxu1 }
  0xe9   :  { %v2882_v46 = vpop.f32.mrb[8].mxu1 }
  0xea   :  { %v485_v47 = vpop.f32.mrb[9].mxu1 }
  0xeb   :  { %v3758_v48 = vpop.f32.mrb[10].mxu1 }
  0xec   :  { %v3760_v49 = vpop.f32.mrb[11].mxu1 }
  0xf1   :  { %v3762_v50 = vpop.f32.mrb[12].mxu1 }
  0xf2   :  { %v3764_v51 = vpop.f32.mrb[13].mxu1 }
  0xf3   :  { %v3766_v52 = vpop.f32.mrb[14].mxu1 }
  0xf4   :  { %v3768_v53 = vpop.f32.mrb[15].mxu1 }
  0xf9   :  { %v3770_v54 = vpop.f32.mrb[16].mxu1 }
  0xfa   :  { %v3772_v55 = vpop.f32.mrb[17].mxu1 }
  0xfb   :  { %v3774_v56 = vpop.f32.mrb[18].mxu1 }
  0xfc   :  { %v3776_v57 = vpop.f32.mrb[19].mxu1 }
 0x101   :  { %v3778_v58 = vpop.f32.mrb[20].mxu1 }
 0x102   :  { %v3780_v59 = vpop.f32.mrb[21].mxu1 }
 0x103   :  { %v3782_v60 = vpop.f32.mrb[22].mxu1 }
 0x104   :  { %v3784_v61 = vpop.f32.mrb[23].mxu1 }
 0x109   :  { %v3786_v62 = vpop.f32.mrb[24].mxu1 }
 0x10a   :  { %v3788_v63 = vpop.f32.mrb[25].mxu1 }
 0x10b   :  { %v3790_v0 = vpop.f32.mrb[26].mxu1 }
 0x10c   :  { %v3792_v1 = vpop.f32.mrb[27].mxu1 }
 0x111   :  { %v3794_v2 = vpop.f32.mrb[28].mxu1 }
 0x112   :  { %v3796_v3 = vpop.f32.mrb[29].mxu1 }
 0x113   :  { %v3798_v4 = vpop.f32.mrb[30].mxu1 }
 0x114   :  { %v3800_v5 = vpop.f32.mrb[31].mxu1 }
 0x11a   :  { %v3006_v6 = vpop.f32.mrb[0].mxu0 }
 0x11b   :  { %v3802_v7 = vadd.f32 %v3006_v6, %v2874_v38  ;;  %v1627_v8 = vpop.f32.mrb[1].mxu0 }
 0x11c   :  { %v3804_v9 = vadd.f32 %v1627_v8, %v453_v39  ;;  %v3007_v10 = vpop.f32.mrb[2].mxu0 }
 0x11d   :  { %v3806_v11 = vadd.f32 %v3007_v10, %v2875_v40  ;;  %v1630_v12 = vpop.f32.mrb[3].mxu0  ;;  %v2017_v17 = vmul.f32 %v3802_v7, %v3802_v7 }
 0x11e   :  { %v3808_v13 = vadd.f32 %v1630_v12, %v456_v41  ;;  %v2015_v14 = vmul.f32 %v3804_v9, %v3804_v9 }
 0x11f   :  { %v2018_v23 = vmul.f32 %v3806_v11, %v3806_v11 }
 0x120   :  { %v1946_v15 = vadd.f32 %v3808_v13, %v3804_v9  ;;  %v2016_v16 = vmul.f32 %v3808_v13, %v3808_v13 }
 0x122   :  { %v1947_v18 = vadd.f32 %v3802_v7, %v1946_v15  ;;  %v2079_v19 = vadd.f32 %v2016_v16, %v2015_v14  ;;  %v3010_v20 = vpop.f32.mrb[4].mxu0 }
 0x123   :  { %v3819_v21 = vadd.f32 %v3010_v20, %v2878_v42  ;;  %v1643_v22 = vpop.f32.mrb[5].mxu0 }
 0x124   :  { %v2080_v24 = vadd.f32 %v2079_v19, %v2017_v17  ;;  %v3823_v25 = vadd.f32 %v1643_v22, %v469_v43  ;;  %v1948_v26 = vadd.f32 %v3806_v11, %v1947_v18  ;;  %v3011_v27 = vpop.f32.mrb[6].mxu0 }
 0x125   :  { %v3826_v28 = vadd.f32 %v3011_v27, %v2879_v44  ;;  %v1646_v29 = vpop.f32.mrb[7].mxu0  ;;  %v2021_v37 = vmul.f32 %v3819_v21, %v3819_v21 }
 0x126   :  { %v1949_v30 = vadd.f32 %v3823_v25, %v1948_v26  ;;  %v2019_v31 = vmul.f32 %v3823_v25, %v3823_v25  ;;  %v2081_v32 = vadd.f32 %v2080_v24, %v2018_v23  ;;  %v3831_v33 = vadd.f32 %v1646_v29, %v472_v45 }
 0x127   :  { %v2022_v43 = vmul.f32 %v3826_v28, %v3826_v28 }
 0x128   :  { %v2082_v34 = vadd.f32 %v2081_v32, %v2019_v31  ;;  %v1950_v35 = vadd.f32 %v3831_v33, %v1949_v30  ;;  %v2020_v36 = vmul.f32 %v3831_v33, %v3831_v33 }
 0x12a   :  { %v1951_v38 = vadd.f32 %v3819_v21, %v1950_v35  ;;  %v2083_v39 = vadd.f32 %v2082_v34, %v2020_v36  ;;  %v3014_v40 = vpop.f32.mrb[8].mxu0 }
 0x12b   :  { %v3839_v41 = vadd.f32 %v3014_v40, %v2882_v46  ;;  %v1659_v42 = vpop.f32.mrb[9].mxu0 }
 0x12c   :  { %v2084_v44 = vadd.f32 %v2083_v39, %v2021_v37  ;;  %v3843_v45 = vadd.f32 %v1659_v42, %v485_v47  ;;  %v1952_v6 = vadd.f32 %v3826_v28, %v1951_v38  ;;  %v3015_v8 = vpop.f32.mrb[10].mxu0 }
 0x12d   :  { %v3847_v10 = vadd.f32 %v3015_v8, %v3758_v48  ;;  %v1662_v12 = vpop.f32.mrb[11].mxu0  ;;  %v2025_v48 = vmul.f32 %v3839_v41, %v3839_v41 }
 0x12e   :  { %v1953_v14 = vadd.f32 %v3843_v45, %v1952_v6  ;;  %v2023_v46 = vmul.f32 %v3843_v45, %v3843_v45  ;;  %v2085_v15 = vadd.f32 %v2084_v44, %v2022_v43  ;;  %v3853_v16 = vadd.f32 %v1662_v12, %v3760_v49 }
 0x12f   :  { %v2026_v49 = vmul.f32 %v3847_v10, %v3847_v10 }
 0x130   :  { %v2086_v17 = vadd.f32 %v2085_v15, %v2023_v46  ;;  %v1954_v47 = vadd.f32 %v3853_v16, %v1953_v14  ;;  %v2024_v18 = vmul.f32 %v3853_v16, %v3853_v16 }
 0x132   :  { %v1955_v19 = vadd.f32 %v3839_v41, %v1954_v47  ;;  %v2087_v20 = vadd.f32 %v2086_v17, %v2024_v18  ;;  %v3018_v22 = vpop.f32.mrb[12].mxu0 }
 0x133   :  { %v3862_v23 = vadd.f32 %v3018_v22, %v3762_v50  ;;  %v1675_v24 = vpop.f32.mrb[13].mxu0 }
 0x134   :  { %v2088_v26 = vadd.f32 %v2087_v20, %v2025_v48  ;;  %v3867_v27 = vadd.f32 %v1675_v24, %v3764_v51  ;;  %v1956_v29 = vadd.f32 %v3847_v10, %v1955_v19  ;;  %v3019_v30 = vpop.f32.mrb[14].mxu0 }
 0x135   :  { %v3871_v31 = vadd.f32 %v3019_v30, %v3766_v52  ;;  %v1678_v32 = vpop.f32.mrb[15].mxu0  ;;  %v2029_v52 = vmul.f32 %v3862_v23, %v3862_v23 }
 0x136   :  { %v1957_v34 = vadd.f32 %v3867_v27, %v1956_v29  ;;  %v2027_v50 = vmul.f32 %v3867_v27, %v3867_v27  ;;  %v2089_v35 = vadd.f32 %v2088_v26, %v2026_v49  ;;  %v3877_v36 = vadd.f32 %v1678_v32, %v3768_v53 }
 0x137   :  { %v2030_v53 = vmul.f32 %v3871_v31, %v3871_v31 }
 0x138   :  { %v2090_v37 = vadd.f32 %v2089_v35, %v2027_v50  ;;  %v1958_v51 = vadd.f32 %v3877_v36, %v1957_v34  ;;  %v2028_v38 = vmul.f32 %v3877_v36, %v3877_v36 }
 0x13a   :  { %v1959_v39 = vadd.f32 %v3862_v23, %v1958_v51  ;;  %v2091_v40 = vadd.f32 %v2090_v37, %v2028_v38  ;;  %v3022_v42 = vpop.f32.mrb[16].mxu0 }
 0x13b   :  { %v3886_v43 = vadd.f32 %v3022_v42, %v3770_v54  ;;  %v1691_v44 = vpop.f32.mrb[17].mxu0 }
 0x13c   :  { %v2092_v6 = vadd.f32 %v2091_v40, %v2029_v52  ;;  %v3891_v8 = vadd.f32 %v1691_v44, %v3772_v55  ;;  %v1960_v12 = vadd.f32 %v3871_v31, %v1959_v39  ;;  %v3023_v14 = vpop.f32.mrb[18].mxu0 }
 0x13d   :  { %v3895_v46 = vadd.f32 %v3023_v14, %v3774_v56  ;;  %v1694_v15 = vpop.f32.mrb[19].mxu0  ;;  %v2033_v56 = vmul.f32 %v3886_v43, %v3886_v43 }
 0x13e   :  { %v1961_v17 = vadd.f32 %v3891_v8, %v1960_v12  ;;  %v2031_v54 = vmul.f32 %v3891_v8, %v3891_v8  ;;  %v2093_v47 = vadd.f32 %v2092_v6, %v2030_v53  ;;  %v3901_v18 = vadd.f32 %v1694_v15, %v3776_v57 }
 0x13f   :  { %v2034_v57 = vmul.f32 %v3895_v46, %v3895_v46 }
 0x140   :  { %v2094_v48 = vadd.f32 %v2093_v47, %v2031_v54  ;;  %v1962_v55 = vadd.f32 %v3901_v18, %v1961_v17  ;;  %v2032_v19 = vmul.f32 %v3901_v18, %v3901_v18 }
 0x142   :  { %v1963_v20 = vadd.f32 %v3886_v43, %v1962_v55  ;;  %v2095_v22 = vadd.f32 %v2094_v48, %v2032_v19  ;;  %v3026_v24 = vpop.f32.mrb[20].mxu0 }
 0x143   :  { %v3910_v49 = vadd.f32 %v3026_v24, %v3778_v58  ;;  %v1707_v26 = vpop.f32.mrb[21].mxu0 }
 0x144   :  { %v2096_v29 = vadd.f32 %v2095_v22, %v2033_v56  ;;  %v3915_v30 = vadd.f32 %v1707_v26, %v3780_v59  ;;  %v1964_v32 = vadd.f32 %v3895_v46, %v1963_v20  ;;  %v3027_v34 = vpop.f32.mrb[22].mxu0 }
 0x145   :  { %v3919_v50 = vadd.f32 %v3027_v34, %v3782_v60  ;;  %v1710_v35 = vpop.f32.mrb[23].mxu0  ;;  %v2037_v60 = vmul.f32 %v3910_v49, %v3910_v49 }
 0x146   :  { %v1965_v37 = vadd.f32 %v3915_v30, %v1964_v32  ;;  %v2035_v58 = vmul.f32 %v3915_v30, %v3915_v30  ;;  %v2097_v51 = vadd.f32 %v2096_v29, %v2034_v57  ;;  %v3925_v38 = vadd.f32 %v1710_v35, %v3784_v61 }
 0x147   :  { %v2038_v61 = vmul.f32 %v3919_v50, %v3919_v50 }
 0x148   :  { %v2098_v52 = vadd.f32 %v2097_v51, %v2035_v58  ;;  %v1966_v59 = vadd.f32 %v3925_v38, %v1965_v37  ;;  %v2036_v39 = vmul.f32 %v3925_v38, %v3925_v38 }
 0x14a   :  { %v1967_v40 = vadd.f32 %v3910_v49, %v1966_v59  ;;  %v2099_v42 = vadd.f32 %v2098_v52, %v2036_v39  ;;  %v3030_v44 = vpop.f32.mrb[24].mxu0 }
 0x14b   :  { %v3934_v53 = vadd.f32 %v3030_v44, %v3786_v62  ;;  %v1723_v6 = vpop.f32.mrb[25].mxu0 }
 0x14c   :  { %v2100_v12 = vadd.f32 %v2099_v42, %v2037_v60  ;;  %v3939_v14 = vadd.f32 %v1723_v6, %v3788_v63  ;;  %v1968_v15 = vadd.f32 %v3919_v50, %v1967_v40  ;;  %v3031_v17 = vpop.f32.mrb[26].mxu0 }
 0x14d   :  { %v3943_v54 = vadd.f32 %v3031_v17, %v3790_v0  ;;  %v1726_v47 = vpop.f32.mrb[27].mxu0  ;;  %v2041_v0 = vmul.f32 %v3934_v53, %v3934_v53 }
 0x14e   :  { %v1969_v48 = vadd.f32 %v3939_v14, %v1968_v15  ;;  %v2039_v62 = vmul.f32 %v3939_v14, %v3939_v14  ;;  %v2101_v55 = vadd.f32 %v2100_v12, %v2038_v61  ;;  %v3949_v19 = vadd.f32 %v1726_v47, %v3792_v1 }
 0x14f   :  { %v2042_v1 = vmul.f32 %v3943_v54, %v3943_v54 }
 0x150   :  { %v2102_v56 = vadd.f32 %v2101_v55, %v2039_v62  ;;  %v1970_v63 = vadd.f32 %v3949_v19, %v1969_v48  ;;  %v2040_v20 = vmul.f32 %v3949_v19, %v3949_v19 }
 0x152   :  { %v1971_v22 = vadd.f32 %v3934_v53, %v1970_v63  ;;  %v2103_v24 = vadd.f32 %v2102_v56, %v2040_v20  ;;  %v3034_v26 = vpop.f32.mrb[28].mxu0 }
 0x153   :  { %v3958_v57 = vadd.f32 %v3034_v26, %v3794_v2  ;;  %v1739_v29 = vpop.f32.mrb[29].mxu0 }
 0x154   :  { %v2104_v32 = vadd.f32 %v2103_v24, %v2041_v0  ;;  %v3963_v34 = vadd.f32 %v1739_v29, %v3796_v3  ;;  %v1972_v35 = vadd.f32 %v3943_v54, %v1971_v22  ;;  %v3035_v37 = vpop.f32.mrb[30].mxu0 }
 0x155   :  { %v3967_v58 = vadd.f32 %v3035_v37, %v3798_v4  ;;  %v1742_v51 = vpop.f32.mrb[31].mxu0  ;;  %v2045_v4 = vmul.f32 %v3958_v57, %v3958_v57 }
 0x156   :  { %v1973_v52 = vadd.f32 %v3963_v34, %v1972_v35  ;;  %v2043_v2 = vmul.f32 %v3963_v34, %v3963_v34  ;;  %v2105_v59 = vadd.f32 %v2104_v32, %v2042_v1  ;;  %v3973_v39 = vadd.f32 %v1742_v51, %v3800_v5 }
 0x157   :  { %v2046_v47 = vmul.f32 %v3967_v58, %v3967_v58 }
 0x158   :  { %v2106_v60 = vadd.f32 %v2105_v59, %v2043_v2  ;;  %v1974_v3 = vadd.f32 %v3973_v39, %v1973_v52  ;;  %v2044_v40 = vmul.f32 %v3973_v39, %v3973_v39 }
 0x159   :  { %v2972_v42 = vpop.f32.mrb[32].mxu1 }
 0x15a   :  { %v1975_v44 = vadd.f32 %v3958_v57, %v1974_v3  ;;  %v2107_v6 = vadd.f32 %v2106_v60, %v2044_v40  ;;  %v3038_v61 = vpop.f32.mrb[32].mxu0  ;;  %v1134_v12 = vpop.f32.mrb[33].mxu1 }
 0x15b   :  { %v3981_v15 = vadd.f32 %v3038_v61, %v2972_v42  ;;  %v1755_v17 = vpop.f32.mrb[33].mxu0  ;;  %v2973_v5 = vpop.f32.mrb[34].mxu1 }
 0x15c   :  { %v2108_v48 = vadd.f32 %v2107_v6, %v2045_v4  ;;  %v3985_v62 = vadd.f32 %v1755_v17, %v1134_v12  ;;  %v1976_v55 = vadd.f32 %v3967_v58, %v1975_v44  ;;  %v3039_v56 = vpop.f32.mrb[34].mxu0  ;;  %v1137_v63 = vpop.f32.mrb[35].mxu1 }
 0x15d   :  { %v3988_v20 = vadd.f32 %v3039_v56, %v2973_v5  ;;  %v1758_v0 = vpop.f32.mrb[35].mxu0  ;;  %v2049_v51 = vmul.f32 %v3981_v15, %v3981_v15 }
 0x15e   :  { %v1977_v22 = vadd.f32 %v3985_v62, %v1976_v55  ;;  %v2047_v24 = vmul.f32 %v3985_v62, %v3985_v62  ;;  %v2109_v26 = vadd.f32 %v2108_v48, %v2046_v47  ;;  %v3993_v29 = vadd.f32 %v1758_v0, %v1137_v63 }
 0x15f   :  { %v2050_v4 = vmul.f32 %v3988_v20, %v3988_v20 }
 0x160   :  { %v2110_v1 = vadd.f32 %v2109_v26, %v2047_v24  ;;  %v1978_v32 = vadd.f32 %v3993_v29, %v1977_v22  ;;  %v2048_v35 = vmul.f32 %v3993_v29, %v3993_v29 }
 0x161   :  { %v2976_v37 = vpop.f32.mrb[36].mxu1 }
 0x162   :  { %v1979_v52 = vadd.f32 %v3981_v15, %v1978_v32  ;;  %v2111_v2 = vadd.f32 %v2110_v1, %v2048_v35  ;;  %v3042_v59 = vpop.f32.mrb[36].mxu0  ;;  %v1150_v60 = vpop.f32.mrb[37].mxu1 }
 0x163   :  { %v4001_v3 = vadd.f32 %v3042_v59, %v2976_v37  ;;  %v1771_v40 = vpop.f32.mrb[37].mxu0  ;;  %v2977_v42 = vpop.f32.mrb[38].mxu1 }
 0x164   :  { %v2112_v44 = vadd.f32 %v2111_v2, %v2049_v51  ;;  %v4005_v6 = vadd.f32 %v1771_v40, %v1150_v60  ;;  %v1980_v61 = vadd.f32 %v3988_v20, %v1979_v52  ;;  %v3043_v12 = vpop.f32.mrb[38].mxu0  ;;  %v1153_v17 = vpop.f32.mrb[39].mxu1 }
 0x165   :  { %4766 = vst [vmem:[#allocation5_spill] sm:$0xff] %v4001_v3  ;;  %v4008_v5 = vadd.f32 %v3043_v12, %v2977_v42  ;;  %v1774_v47 = vpop.f32.mrb[39].mxu0  ;;  %v2053_v1 = vmul.f32 %v4001_v3, %v4001_v3 }
 0x166   :  { %v1981_v48 = vadd.f32 %v4005_v6, %v1980_v61  ;;  %v2051_v55 = vmul.f32 %v4005_v6, %v4005_v6  ;;  %v2113_v56 = vadd.f32 %v2112_v44, %v2050_v4  ;;  %v4013_v63 = vadd.f32 %v1774_v47, %v1153_v17 }
 0x167   :  { %4767 = vst [vmem:[#allocation6_spill] sm:$0xff] %v4008_v5  ;;  %v2054_v60 = vmul.f32 %v4008_v5, %v4008_v5 }
 0x168   :  { %v2114_v0 = vadd.f32 %v2113_v56, %v2051_v55  ;;  %v1982_v22 = vadd.f32 %v4013_v63, %v1981_v48  ;;  %v2052_v24 = vmul.f32 %v4013_v63, %v4013_v63 }
 0x169   :  { %v2980_v26 = vpop.f32.mrb[40].mxu1 }
 0x16a   :  { %v1983_v32 = vadd.f32 %v4001_v3, %v1982_v22  ;;  %v2115_v35 = vadd.f32 %v2114_v0, %v2052_v24  ;;  %v3046_v37 = vpop.f32.mrb[40].mxu0  ;;  %v1166_v51 = vpop.f32.mrb[41].mxu1 }
 0x16b   :  { %v4021_v52 = vadd.f32 %v3046_v37, %v2980_v26  ;;  %v1787_v2 = vpop.f32.mrb[41].mxu0  ;;  %v2981_v59 = vpop.f32.mrb[42].mxu1 }
 0x16c   :  { %v2116_v40 = vadd.f32 %v2115_v35, %v2053_v1  ;;  %v4025_v42 = vadd.f32 %v1787_v2, %v1166_v51  ;;  %v1984_v4 = vadd.f32 %v4008_v5, %v1983_v32  ;;  %v3047_v44 = vpop.f32.mrb[42].mxu0  ;;  %v1169_v61 = vpop.f32.mrb[43].mxu1 }
 0x16d   :  { %4768 = vst [vmem:[#allocation7_spill] sm:$0xff] %v4021_v52  ;;  %v4028_v12 = vadd.f32 %v3047_v44, %v2981_v59  ;;  %v1790_v17 = vpop.f32.mrb[43].mxu0  ;;  %v2057_v1 = vmul.f32 %v4021_v52, %v4021_v52 }
 0x16e   :  { %4769 = vst [vmem:[#allocation8_spill] sm:$0xff] %v4025_v42  ;;  %v1985_v47 = vadd.f32 %v4025_v42, %v1984_v4  ;;  %v2055_v48 = vmul.f32 %v4025_v42, %v4025_v42  ;;  %v2117_v55 = vadd.f32 %v2116_v40, %v2054_v60  ;;  %v4033_v56 = vadd.f32 %v1790_v17, %v1169_v61 }
 0x16f   :  { %4770 = vst [vmem:[#allocation9_spill] sm:$0xff] %v4028_v12  ;;  %v2058_v40 = vmul.f32 %v4028_v12, %v4028_v12 }
 0x170   :  { %4771 = vst [vmem:[#allocation10_spill] sm:$0xff] %v4033_v56  ;;  %v2118_v0 = vadd.f32 %v2117_v55, %v2055_v48  ;;  %v1986_v22 = vadd.f32 %v4033_v56, %v1985_v47  ;;  %v2056_v24 = vmul.f32 %v4033_v56, %v4033_v56 }
 0x171   :  { %v2984_v26 = vpop.f32.mrb[44].mxu1 }
 0x172   :  { %v1987_v32 = vadd.f32 %v4021_v52, %v1986_v22  ;;  %v2119_v35 = vadd.f32 %v2118_v0, %v2056_v24  ;;  %v3050_v37 = vpop.f32.mrb[44].mxu0  ;;  %v1182_v51 = vpop.f32.mrb[45].mxu1 }
 0x173   :  { %v4041_v2 = vadd.f32 %v3050_v37, %v2984_v26  ;;  %v1803_v59 = vpop.f32.mrb[45].mxu0  ;;  %v2985_v60 = vpop.f32.mrb[46].mxu1 }
 0x174   :  { %v2120_v4 = vadd.f32 %v2119_v35, %v2057_v1  ;;  %v4045_v44 = vadd.f32 %v1803_v59, %v1182_v51  ;;  %v1988_v61 = vadd.f32 %v4028_v12, %v1987_v32  ;;  %v3051_v17 = vpop.f32.mrb[46].mxu0  ;;  %v1185_v47 = vpop.f32.mrb[47].mxu1 }
 0x175   :  { %4772 = vst [vmem:[#allocation11_spill] sm:$0xff] %v4041_v2  ;;  %v4048_v48 = vadd.f32 %v3051_v17, %v2985_v60  ;;  %v1806_v55 = vpop.f32.mrb[47].mxu0  ;;  %v2061_v51 = vmul.f32 %v4041_v2, %v4041_v2 }
 0x176   :  { %4773 = vst [vmem:[#allocation12_spill] sm:$0xff] %v4045_v44  ;;  %v1989_v0 = vadd.f32 %v4045_v44, %v1988_v61  ;;  %v2059_v22 = vmul.f32 %v4045_v44, %v4045_v44  ;;  %v2121_v24 = vadd.f32 %v2120_v4, %v2058_v40  ;;  %v4053_v26 = vadd.f32 %v1806_v55, %v1185_v47 }
 0x177   :  { %4774 = vst [vmem:[#allocation13_spill] sm:$0xff] %v4048_v48  ;;  %v2062_v47 = vmul.f32 %v4048_v48, %v4048_v48 }
 0x178   :  { %4775 = vst [vmem:[#allocation14_spill] sm:$0xff] %v4053_v26  ;;  %v2122_v37 = vadd.f32 %v2121_v24, %v2059_v22  ;;  %v1990_v1 = vadd.f32 %v4053_v26, %v1989_v0  ;;  %v2060_v35 = vmul.f32 %v4053_v26, %v4053_v26 }
 0x179   :  { %v2988_v32 = vpop.f32.mrb[48].mxu1 }
 0x17a   :  { %v1991_v59 = vadd.f32 %v4041_v2, %v1990_v1  ;;  %v2123_v60 = vadd.f32 %v2122_v37, %v2060_v35  ;;  %v3054_v61 = vpop.f32.mrb[48].mxu0  ;;  %v1198_v17 = vpop.f32.mrb[49].mxu1 }
 0x17b   :  { %v4061_v12 = vadd.f32 %v3054_v61, %v2988_v32  ;;  %v1819_v40 = vpop.f32.mrb[49].mxu0  ;;  %v2989_v4 = vpop.f32.mrb[50].mxu1 }
 0x17c   :  { %v2124_v55 = vadd.f32 %v2123_v60, %v2061_v51  ;;  %v4065_v0 = vadd.f32 %v1819_v40, %v1198_v17  ;;  %v1992_v22 = vadd.f32 %v4048_v48, %v1991_v59  ;;  %v3055_v24 = vpop.f32.mrb[50].mxu0  ;;  %v1201_v26 = vpop.f32.mrb[51].mxu1 }
 0x17d   :  { %4776 = vst [vmem:[#allocation15_spill] sm:$0xff] %v4061_v12  ;;  %v4068_v44 = vadd.f32 %v3055_v24, %v2989_v4  ;;  %v1822_v1 = vpop.f32.mrb[51].mxu0  ;;  %v2065_v17 = vmul.f32 %v4061_v12, %v4061_v12 }
 0x17e   :  { %4777 = vst [vmem:[#allocation16_spill] sm:$0xff] %v4065_v0  ;;  %v1993_v37 = vadd.f32 %v4065_v0, %v1992_v22  ;;  %v2063_v35 = vmul.f32 %v4065_v0, %v4065_v0  ;;  %v2125_v32 = vadd.f32 %v2124_v55, %v2062_v47  ;;  %v4073_v61 = vadd.f32 %v1822_v1, %v1201_v26 }
 0x17f   :  { %4778 = vst [vmem:[#allocation17_spill] sm:$0xff] %v4068_v44  ;;  %v2066_v55 = vmul.f32 %v4068_v44, %v4068_v44 }
 0x180   :  { %4779 = vst [vmem:[#allocation18_spill] sm:$0xff] %v4073_v61  ;;  %v2126_v2 = vadd.f32 %v2125_v32, %v2063_v35  ;;  %v1994_v51 = vadd.f32 %v4073_v61, %v1993_v37  ;;  %v2064_v60 = vmul.f32 %v4073_v61, %v4073_v61 }
 0x181   :  { %v2992_v59 = vpop.f32.mrb[52].mxu1 }
 0x182   :  { %v1995_v40 = vadd.f32 %v4061_v12, %v1994_v51  ;;  %v2127_v4 = vadd.f32 %v2126_v2, %v2064_v60  ;;  %v3058_v22 = vpop.f32.mrb[52].mxu0  ;;  %v1214_v24 = vpop.f32.mrb[53].mxu1 }
 0x183   :  { %v4081_v48 = vadd.f32 %v3058_v22, %v2992_v59  ;;  %v1835_v47 = vpop.f32.mrb[53].mxu0  ;;  %v2993_v26 = vpop.f32.mrb[54].mxu1 }
 0x184   :  { %v2128_v1 = vadd.f32 %v2127_v4, %v2065_v17  ;;  %v4085_v37 = vadd.f32 %v1835_v47, %v1214_v24  ;;  %v1996_v35 = vadd.f32 %v4068_v44, %v1995_v40  ;;  %v3059_v32 = vpop.f32.mrb[54].mxu0  ;;  %v1217_v61 = vpop.f32.mrb[55].mxu1 }
 0x185   :  { %4780 = vst [vmem:[#allocation19_spill] sm:$0xff] %v4081_v48  ;;  %v4088_v0 = vadd.f32 %v3059_v32, %v2993_v26  ;;  %v1838_v51 = vpop.f32.mrb[55].mxu0  ;;  %v2069_v24 = vmul.f32 %v4081_v48, %v4081_v48 }
 0x186   :  { %4781 = vst [vmem:[#allocation20_spill] sm:$0xff] %v4085_v37  ;;  %v1997_v2 = vadd.f32 %v4085_v37, %v1996_v35  ;;  %v2067_v60 = vmul.f32 %v4085_v37, %v4085_v37  ;;  %v2129_v59 = vadd.f32 %v2128_v1, %v2066_v55  ;;  %v4093_v22 = vadd.f32 %v1838_v51, %v1217_v61 }
 0x187   :  { %4782 = vst [vmem:[#allocation21_spill] sm:$0xff] %v4088_v0  ;;  %v2070_v1 = vmul.f32 %v4088_v0, %v4088_v0 }
 0x188   :  { %4783 = vst [vmem:[#allocation22_spill] sm:$0xff] %v4093_v22  ;;  %v2130_v12 = vadd.f32 %v2129_v59, %v2067_v60  ;;  %v1998_v17 = vadd.f32 %v4093_v22, %v1997_v2  ;;  %v2068_v4 = vmul.f32 %v4093_v22, %v4093_v22 }
 0x189   :  { %v2996_v40 = vpop.f32.mrb[56].mxu1 }
 0x18a   :  { %v1999_v47 = vadd.f32 %v4081_v48, %v1998_v17  ;;  %v2131_v26 = vadd.f32 %v2130_v12, %v2068_v4  ;;  %v3062_v35 = vpop.f32.mrb[56].mxu0  ;;  %v1230_v32 = vpop.f32.mrb[57].mxu1 }
 0x18b   :  { %v4101_v44 = vadd.f32 %v3062_v35, %v2996_v40  ;;  %v1851_v55 = vpop.f32.mrb[57].mxu0  ;;  %v2997_v61 = vpop.f32.mrb[58].mxu1 }
 0x18c   :  { %v2132_v51 = vadd.f32 %v2131_v26, %v2069_v24  ;;  %v4105_v2 = vadd.f32 %v1851_v55, %v1230_v32  ;;  %v2000_v60 = vadd.f32 %v4088_v0, %v1999_v47  ;;  %v3063_v59 = vpop.f32.mrb[58].mxu0  ;;  %v1233_v22 = vpop.f32.mrb[59].mxu1 }
 0x18d   :  { %4784 = vst [vmem:[#allocation23_spill] sm:$0xff] %v4101_v44  ;;  %v4108_v37 = vadd.f32 %v3063_v59, %v2997_v61  ;;  %v1854_v17 = vpop.f32.mrb[59].mxu0  ;;  %v2073_v32 = vmul.f32 %v4101_v44, %v4101_v44 }
 0x18e   :  { %4785 = vst [vmem:[#allocation24_spill] sm:$0xff] %v4105_v2  ;;  %v2001_v12 = vadd.f32 %v4105_v2, %v2000_v60  ;;  %v2071_v4 = vmul.f32 %v4105_v2, %v4105_v2  ;;  %v2133_v40 = vadd.f32 %v2132_v51, %v2070_v1  ;;  %v4113_v35 = vadd.f32 %v1854_v17, %v1233_v22 }
 0x18f   :  { %4786 = vst [vmem:[#allocation25_spill] sm:$0xff] %v4108_v37  ;;  %v2074_v51 = vmul.f32 %v4108_v37, %v4108_v37 }
 0x190   :  { %4787 = vst [vmem:[#allocation26_spill] sm:$0xff] %v4113_v35  ;;  %v2134_v48 = vadd.f32 %v2133_v40, %v2071_v4  ;;  %v2002_v24 = vadd.f32 %v4113_v35, %v2001_v12  ;;  %v2072_v26 = vmul.f32 %v4113_v35, %v4113_v35 }
 0x191   :  { %v3000_v47 = vpop.f32.mrb[60].mxu1 }
 0x192   :  { %v2003_v55 = vadd.f32 %v4101_v44, %v2002_v24  ;;  %v2135_v61 = vadd.f32 %v2134_v48, %v2072_v26  ;;  %v3066_v60 = vpop.f32.mrb[60].mxu0  ;;  %v1246_v59 = vpop.f32.mrb[61].mxu1 }
 0x193   :  { %v4121_v0 = vadd.f32 %v3066_v60, %v3000_v47  ;;  %v1867_v1 = vpop.f32.mrb[61].mxu0  ;;  %v3001_v22 = vpop.f32.mrb[62].mxu1 }
 0x194   :  { %v2136_v17 = vadd.f32 %v2135_v61, %v2073_v32  ;;  %v4125_v12 = vadd.f32 %v1867_v1, %v1246_v59  ;;  %v2004_v4 = vadd.f32 %v4108_v37, %v2003_v55  ;;  %v3067_v40 = vpop.f32.mrb[62].mxu0  ;;  %v1249_v35 = vpop.f32.mrb[63].mxu1 }
 0x195   :  { %4788 = vst [vmem:[#allocation27_spill] sm:$0xff] %v4121_v0  ;;  %v4128_v2 = vadd.f32 %v3067_v40, %v3001_v22  ;;  %v1870_v24 = vpop.f32.mrb[63].mxu0  ;;  %v2077_v32 = vmul.f32 %v4121_v0, %v4121_v0 }
 0x196   :  { %4789 = vst [vmem:[#allocation28_spill] sm:$0xff] %v4125_v12  ;;  %v2005_v48 = vadd.f32 %v4125_v12, %v2004_v4  ;;  %v2075_v26 = vmul.f32 %v4125_v12, %v4125_v12  ;;  %v2137_v47 = vadd.f32 %v2136_v17, %v2074_v51  ;;  %v3133_v60 = vadd.f32 %v1870_v24, %v1249_v35 }
 0x197   :  { %v2078_v59 = vmul.f32 %v4128_v2, %v4128_v2 }
 0x198   :  { %v2138_v44 = vadd.f32 %v2137_v47, %v2075_v26  ;;  %v2006_v52 = vadd.f32 %v3133_v60, %v2005_v48  ;;  %v2076_v56 = vmul.f32 %v3133_v60, %v3133_v60 }
 0x19a   :  { %v2007_v55 = vadd.f32 %v4121_v0, %v2006_v52  ;;  %v2139_v61 = vadd.f32 %v2138_v44, %v2076_v56 }
 0x19c   :  { %v2008_v1 = vadd.f32 %v4128_v2, %v2007_v55  ;;  %v2140_v22 = vadd.f32 %v2139_v61, %v2077_v32  ;;  %v2161_v32 = vlaneseq }
 0x19e   :  { %v2009_v4 = vrot.slane %v2008_v1, 4  ;;  %v2141_v40 = vadd.f32 %v2140_v22, %v2078_v59  ;;  %v2162_v61 = vshrl.u32 %v2161_v32, 7  ;;  %v2155_v59 = vld [vmem:[%s4739_s2] sm:$0x1]  ;;  %s3330_s2 = smov [#allocation2]  }
 0x1a0   :  { %v2010_v12 = vadd.f32 %v2009_v4, %v2008_v1  ;;  %v2142_v51 = vrot.slane %v2141_v40, 4 }
 0x1a2   :  { %v2011_v35 = vrot.slane %v2010_v12, 2  ;;  %v2143_v17 = vadd.f32 %v2142_v51, %v2141_v40 }
 0x1a4   :  { %v2012_v24 = vadd.f32 %v2011_v35, %v2010_v12  ;;  %v2144_v48 = vrot.slane %v2143_v17, 2  ;;  %v2163_v12 = vsub.s32 0, %v2162_v61  ;;  %v4796_v61 = vld [vmem:[#allocation12_spill] sm:$0xff] }
 0x1a6   :  { %v2013_v26 = vrot.slane %v2012_v24, 1  ;;  %v2145_v47 = vadd.f32 %v2144_v48, %v2143_v17 }
 0x1a8   :  { %v2014_v37 = vadd.f32 %v2013_v26, %v2012_v24  ;;  %v2146_v42 = vrot.slane %v2145_v47, 1  ;;  %v4790_v26 = vld [vmem:[#allocation5_spill] sm:$0xff] }
 0x1aa   :  { %v2147_v52 = vadd.f32 %v2146_v42, %v2145_v47  ;;  %v2148_v56 = vmul.f32 0.001953125, %v2014_v37  ;;  %v2157_v42 = vld [vmem:[%s4740_s3] sm:$0x1]  ;;  %v4791_v47 = vld [vmem:[#allocation6_spill] sm:$0xff]  ;;  %s2433_s3 = sshll.u32 %s3330_s2, 4  ;;  %s4716_s3 = int_to_ptr.vmem [resolvable:$true] %s2433_s3 }
 0x1ab   :  { %s3306_s27 = scalar_lea.vmem %s4716_s3, 8192  ;;  %p3311_p1 = scmp.lt.s32.totalorder %s4716_s3, %s4716_s3 }
 0x1ac   :  { %v2149_v44 = vmul.f32 0.001953125, %v2147_v52  ;;  %v2150_v0 = vmul.f32 %v2148_v56, %v2148_v56  ;;  %v4792_v52 = vld [vmem:[#allocation8_spill] sm:$0xff]  ;;  %p3307_p0 = scmp.ne.s32.totalorder %s4716_s3, %s3306_s27  ;;  %p3312_p2 = scmp.lt.s32.totalorder %s3306_s27, %s3306_s27 }
 0x1ae   :  { %v2151_v5 = vsub.f32 %v2149_v44, %v2150_v0  ;;  %v4794_v44 = vld [vmem:[#allocation7_spill] sm:$0xff]  ;;  %p3313_p3 = por %p3312_p2, %p3311_p1 }
 0x1b0   :  { %v2152_v3 = vmax.f32 %v2151_v5, 0.0  ;;  %p3314_p4 = pnand %p3313_p3, %p3307_p0 }
 0x1b2   :  { %v2153_v55 = vadd.f32 1e-05, %v2152_v3 }
 0x1b4   :  { %3304 = vrsqrt.f32 %v2153_v55  ;;  %v4795_v55 = vld [vmem:[#allocation9_spill] sm:$0xff] }
 0x1be   :  { %v3305_v1 = vpop.eup %3304 }
 0x1bf   :  { %v2156_v22 = vmul.f32 %v3305_v1, %v2155_v59 }
 0x1c1   :  { %v2158_v37 = vmul.f32 %v2156_v22, %v2148_v56  ;;  %v4145_v4 = vrot.slane %v2156_v22, %v2163_v12  ;;  %v4793_v56 = vld [vmem:[#allocation10_spill] sm:$0xff]  ;;  %v4798_v22 = vld [vmem:[#allocation11_spill] sm:$0xff] }
 0x1c3   :  { %v2159_v0 = vsub.f32 %v2157_v42, %v2158_v37  ;;  %v2227_v3 = vmul.f32 %v3133_v60, %v4145_v4  ;;  %v4150_v5 = vmul.f32 %v3804_v9, %v4145_v4  ;;  %v4154_v40 = vmul.f32 %v3808_v13, %v4145_v4  ;;  %v4799_v37 = vld [vmem:[#allocation13_spill] sm:$0xff] }
 0x1c4   :  { %v4158_v51 = vmul.f32 %v3802_v7, %v4145_v4  ;;  %v4162_v35 = vmul.f32 %v3806_v11, %v4145_v4  ;;  %v4166_v17 = vmul.f32 %v3823_v25, %v4145_v4  ;;  %v4170_v9 = vmul.f32 %v3831_v33, %v4145_v4 }
 0x1c5   :  { %v4172_v60 = vrot.slane %v2159_v0, %v2163_v12  ;;  %v4176_v13 = vmul.f32 %v3819_v21, %v4145_v4  ;;  %v4180_v7 = vmul.f32 %v3826_v28, %v4145_v4  ;;  %v4184_v11 = vmul.f32 %v3843_v45, %v4145_v4  ;;  %v4797_v12 = vld [vmem:[#allocation14_spill] sm:$0xff] }
 0x1c6   :  { %v4188_v25 = vmul.f32 %v3853_v16, %v4145_v4  ;;  %v4192_v33 = vmul.f32 %v3839_v41, %v4145_v4  ;;  %v4196_v21 = vmul.f32 %v3847_v10, %v4145_v4  ;;  %v4200_v28 = vmul.f32 %v3867_v27, %v4145_v4 }
 0x1c7   :  { %v2297_v24 = vadd.f32 %v4172_v60, %v2227_v3  ;;  %v4205_v45 = vmul.f32 %v3877_v36, %v4145_v4  ;;  %v4209_v16 = vmul.f32 %v3862_v23, %v4145_v4  ;;  %v4213_v41 = vmul.f32 %v3871_v31, %v4145_v4  ;;  %v4800_v3 = vld [vmem:[#allocation16_spill] sm:$0xff] }
 0x1c8   :  { %v4217_v10 = vmul.f32 %v3891_v8, %v4145_v4  ;;  %v4221_v27 = vmul.f32 %v3901_v18, %v4145_v4  ;;  %v4225_v36 = vmul.f32 %v3886_v43, %v4145_v4  ;;  %v4229_v23 = vmul.f32 %v3895_v46, %v4145_v4 }
 0x1c9   :  { %v2361_v48 = vmax.f32 %v2297_v24, 0.0  ;;  %v4233_v31 = vmul.f32 %v3915_v30, %v4145_v4  ;;  %v4237_v8 = vmul.f32 %v3925_v38, %v4145_v4  ;;  %v4241_v18 = vmul.f32 %v3910_v49, %v4145_v4 }
 0x1ca   :  { %v4245_v43 = vmul.f32 %v3919_v50, %v4145_v4  ;;  %v4249_v46 = vmul.f32 %v3939_v14, %v4145_v4  ;;  %v4253_v30 = vmul.f32 %v3949_v19, %v4145_v4  ;;  %v4257_v38 = vmul.f32 %v3934_v53, %v4145_v4 }
 0x1cb   :  { %2425 = vst [vmem:[#allocation2 + $0x1e8] sm:$0xff] %v2361_v48  ;;  %v4261_v49 = vmul.f32 %v3943_v54, %v4145_v4  ;;  %v4265_v50 = vmul.f32 %v3963_v34, %v4145_v4  ;;  %v4269_v14 = vmul.f32 %v3973_v39, %v4145_v4  ;;  %v4273_v19 = vmul.f32 %v3958_v57, %v4145_v4  ;;  %v4801_v48 = vld [vmem:[#allocation18_spill] sm:$0xff] }
 0x1cc   :  { %v4277_v53 = vmul.f32 %v3967_v58, %v4145_v4  ;;  %v4281_v54 = vmul.f32 %v3985_v62, %v4145_v4  ;;  %v4285_v34 = vmul.f32 %v3993_v29, %v4145_v4  ;;  %v4289_v39 = vmul.f32 %v3981_v15, %v4145_v4 }
 0x1cd   :  { %v4293_v57 = vmul.f32 %v3988_v20, %v4145_v4  ;;  %v4297_v58 = vmul.f32 %v4005_v6, %v4145_v4  ;;  %v4301_v62 = vmul.f32 %v4013_v63, %v4145_v4  ;;  %v4305_v29 = vmul.f32 %v4790_v26, %v4145_v4 }
 0x1ce   :  { %v4309_v15 = vmul.f32 %v4791_v47, %v4145_v4  ;;  %v4313_v20 = vmul.f32 %v4792_v52, %v4145_v4  ;;  %v4317_v6 = vmul.f32 %v4793_v56, %v4145_v4  ;;  %v4321_v63 = vmul.f32 %v4794_v44, %v4145_v4  ;;  %v4802_v47 = vld [vmem:[#allocation15_spill] sm:$0xff]  ;;  %v4804_v56 = vld [vmem:[#allocation17_spill] sm:$0xff] }
 0x1cf   :  { %v4325_v32 = vmul.f32 %v4795_v55, %v4145_v4  ;;  %v4329_v59 = vmul.f32 %v4796_v61, %v4145_v4  ;;  %v4333_v1 = vmul.f32 %v4797_v12, %v4145_v4  ;;  %v4337_v42 = vmul.f32 %v4798_v22, %v4145_v4  ;;  %v4806_v55 = vld [vmem:[#allocation20_spill] sm:$0xff]  ;;  %v4808_v12 = vld [vmem:[#allocation22_spill] sm:$0xff] }
 0x1d0   :  { %v4341_v0 = vmul.f32 %v4799_v37, %v4145_v4  ;;  %v4345_v24 = vmul.f32 %v4800_v3, %v4145_v4  ;;  %v4349_v26 = vmul.f32 %v4801_v48, %v4145_v4  ;;  %v4353_v52 = vmul.f32 %v4802_v47, %v4145_v4  ;;  %v4810_v37 = vld [vmem:[#allocation19_spill] sm:$0xff]  ;;  %v4812_v48 = vld [vmem:[#allocation21_spill] sm:$0xff] }
 0x1d1   :  { %v4357_v44 = vmul.f32 %v4804_v56, %v4145_v4  ;;  %v4361_v61 = vmul.f32 %v4806_v55, %v4145_v4  ;;  %v4365_v22 = vmul.f32 %v4808_v12, %v4145_v4  ;;  %v4369_v3 = vmul.f32 %v4810_v37, %v4145_v4 }
 0x1d2   :  { %4803 = vst [vmem:[#allocation5_spill] sm:$0xff] %v4353_v52  ;;  %v4373_v47 = vmul.f32 %v4812_v48, %v4145_v4  ;;  %v4814_v52 = vld [vmem:[#allocation24_spill] sm:$0xff] }
 0x1d3   :  { %4805 = vst [vmem:[#allocation6_spill] sm:$0xff] %v4357_v44  ;;  %4807 = vst [vmem:[#allocation8_spill] sm:$0xff] %v4361_v61  ;;  %v4377_v56 = vmul.f32 %v4814_v52, %v4145_v4  ;;  %v4815_v44 = vld [vmem:[#allocation26_spill] sm:$0xff]  ;;  %v4816_v61 = vld [vmem:[#allocation23_spill] sm:$0xff] }
 0x1d4   :  { %4809 = vst [vmem:[#allocation10_spill] sm:$0xff] %v4365_v22  ;;  %4811 = vst [vmem:[#allocation7_spill] sm:$0xff] %v4369_v3  ;;  %v4381_v55 = vmul.f32 %v4815_v44, %v4145_v4  ;;  %v4385_v12 = vmul.f32 %v4816_v61, %v4145_v4  ;;  %v4817_v22 = vld [vmem:[#allocation25_spill] sm:$0xff]  ;;  %v4818_v3 = vld [vmem:[#allocation28_spill] sm:$0xff]  ;;  %v4401_v44 = vmul.f32 %v4128_v2, %v4145_v4 }
 0x1d5   :  { %4813 = vst [vmem:[#allocation9_spill] sm:$0xff] %v4373_v47  ;;  %v4389_v37 = vmul.f32 %v4817_v22, %v4145_v4  ;;  %v4393_v48 = vmul.f32 %v4818_v3, %v4145_v4  ;;  %v4819_v47 = vld [vmem:[#allocation27_spill] sm:$0xff]  ;;  %v4405_v61 = vadd.f32 %v4172_v60, %v4150_v5  ;;  %v4409_v22 = vadd.f32 %v4172_v60, %v4154_v40 }
 0x1d6   :  { %v4397_v52 = vmul.f32 %v4819_v47, %v4145_v4  ;;  %v4413_v3 = vadd.f32 %v4172_v60, %v4158_v51  ;;  %v4417_v47 = vadd.f32 %v4172_v60, %v4162_v35  ;;  %v4421_v2 = vadd.f32 %v4172_v60, %v4166_v17 }
 0x1d7   :  { %v4425_v4 = vadd.f32 %v4172_v60, %v4170_v9  ;;  %v4429_v5 = vadd.f32 %v4172_v60, %v4176_v13  ;;  %v4433_v40 = vadd.f32 %v4172_v60, %v4180_v7  ;;  %v4437_v51 = vadd.f32 %v4172_v60, %v4184_v11 }
 0x1d8   :  { %v4441_v35 = vadd.f32 %v4172_v60, %v4188_v25  ;;  %v4445_v17 = vadd.f32 %v4172_v60, %v4192_v33  ;;  %v4449_v9 = vadd.f32 %v4172_v60, %v4196_v21  ;;  %v4453_v13 = vadd.f32 %v4172_v60, %v4200_v28 }
 0x1d9   :  { %v4457_v7 = vadd.f32 %v4172_v60, %v4205_v45  ;;  %v4461_v11 = vadd.f32 %v4172_v60, %v4209_v16  ;;  %v4465_v25 = vadd.f32 %v4172_v60, %v4213_v41  ;;  %v4469_v33 = vadd.f32 %v4172_v60, %v4217_v10 }
 0x1da   :  { %v4473_v21 = vadd.f32 %v4172_v60, %v4221_v27  ;;  %v4477_v28 = vadd.f32 %v4172_v60, %v4225_v36  ;;  %v4481_v45 = vadd.f32 %v4172_v60, %v4229_v23  ;;  %v4485_v16 = vadd.f32 %v4172_v60, %v4233_v31 }
 0x1db   :  { %v4489_v41 = vadd.f32 %v4172_v60, %v4237_v8  ;;  %v4493_v10 = vadd.f32 %v4172_v60, %v4241_v18  ;;  %v4497_v27 = vadd.f32 %v4172_v60, %v4245_v43  ;;  %v4501_v36 = vadd.f32 %v4172_v60, %v4249_v46 }
 0x1dc   :  { %v4505_v23 = vadd.f32 %v4172_v60, %v4253_v30  ;;  %v4509_v31 = vadd.f32 %v4172_v60, %v4257_v38  ;;  %v4513_v8 = vadd.f32 %v4172_v60, %v4261_v49  ;;  %v4517_v18 = vadd.f32 %v4172_v60, %v4265_v50 }
 0x1dd   :  { %v4521_v43 = vadd.f32 %v4172_v60, %v4269_v14  ;;  %v4525_v46 = vadd.f32 %v4172_v60, %v4273_v19  ;;  %v4529_v30 = vadd.f32 %v4172_v60, %v4277_v53  ;;  %v4533_v38 = vadd.f32 %v4172_v60, %v4281_v54 }
 0x1de   :  { %v4537_v49 = vadd.f32 %v4172_v60, %v4285_v34  ;;  %v4541_v50 = vadd.f32 %v4172_v60, %v4289_v39  ;;  %v4545_v14 = vadd.f32 %v4172_v60, %v4293_v57  ;;  %v4549_v19 = vadd.f32 %v4172_v60, %v4297_v58 }
 0x1df   :  { %v4553_v53 = vadd.f32 %v4172_v60, %v4301_v62  ;;  %v4557_v54 = vadd.f32 %v4172_v60, %v4305_v29  ;;  %v4561_v34 = vadd.f32 %v4172_v60, %v4309_v15  ;;  %v4565_v39 = vadd.f32 %v4172_v60, %v4313_v20 }
 0x1e0   :  { %v4569_v57 = vadd.f32 %v4172_v60, %v4317_v6  ;;  %v4573_v58 = vadd.f32 %v4172_v60, %v4321_v63  ;;  %v4577_v62 = vadd.f32 %v4172_v60, %v4325_v32  ;;  %v4581_v29 = vadd.f32 %v4172_v60, %v4329_v59  ;;  %v4825_v59 = vld [vmem:[#allocation5_spill] sm:$0xff] }
 0x1e1   :  { %v4585_v15 = vadd.f32 %v4172_v60, %v4333_v1  ;;  %v4589_v20 = vadd.f32 %v4172_v60, %v4337_v42  ;;  %v4593_v6 = vadd.f32 %v4172_v60, %v4341_v0  ;;  %v4597_v63 = vadd.f32 %v4172_v60, %v4345_v24 }
 0x1e2   :  { %v4601_v32 = vadd.f32 %v4172_v60, %v4349_v26  ;;  %v4605_v1 = vadd.f32 %v4172_v60, %v4825_v59 }
 0x1e3   :  { %4820 = vst [vmem:[#allocation12_spill] sm:$0xff] %v4585_v15  ;;  %4821 = vst [vmem:[#allocation14_spill] sm:$0xff] %v4589_v20  ;;  %v4826_v15 = vld [vmem:[#allocation6_spill] sm:$0xff]  ;;  %v4827_v20 = vld [vmem:[#allocation8_spill] sm:$0xff] }
 0x1e4   :  { %4822 = vst [vmem:[#allocation11_spill] sm:$0xff] %v4593_v6  ;;  %4823 = vst [vmem:[#allocation13_spill] sm:$0xff] %v4597_v63  ;;  %v4609_v42 = vadd.f32 %v4172_v60, %v4826_v15  ;;  %v4613_v0 = vadd.f32 %v4172_v60, %v4827_v20  ;;  %v4828_v6 = vld [vmem:[#allocation10_spill] sm:$0xff]  ;;  %v4829_v63 = vld [vmem:[#allocation7_spill] sm:$0xff]  ;;  %v4629_v15 = vadd.f32 %v4172_v60, %v4377_v56 }
 0x1e5   :  { %4824 = vst [vmem:[#allocation16_spill] sm:$0xff] %v4601_v32  ;;  %v4617_v24 = vadd.f32 %v4172_v60, %v4828_v6  ;;  %v4621_v26 = vadd.f32 %v4172_v60, %v4829_v63  ;;  %v4830_v32 = vld [vmem:[#allocation9_spill] sm:$0xff]  ;;  %v4633_v20 = vadd.f32 %v4172_v60, %v4381_v55  ;;  %v4637_v6 = vadd.f32 %v4172_v60, %v4385_v12 }
 0x1e6   :  { %v4625_v59 = vadd.f32 %v4172_v60, %v4830_v32  ;;  %v4641_v63 = vadd.f32 %v4172_v60, %v4389_v37  ;;  %v4645_v32 = vadd.f32 %v4172_v60, %v4393_v48  ;;  %v4649_v56 = vadd.f32 %v4172_v60, %v4397_v52 }
 0x1e7   :  { %4831 = vst [vmem:[#allocation18_spill] sm:$0xff] %v4633_v20  ;;  %4832 = vst [vmem:[#allocation15_spill] sm:$0xff] %v4637_v6  ;;  %v4653_v55 = vadd.f32 %v4172_v60, %v4401_v44  ;;  %v2300_v20 = vmax.f32 %v4405_v61, 0.0  ;;  %v2301_v12 = vmax.f32 %v4409_v22, 0.0  ;;  %v2302_v6 = vmax.f32 %v4413_v3, 0.0 }
 0x1e8   :  { %4833 = vst [vmem:[#allocation17_spill] sm:$0xff] %v4641_v63  ;;  %4834 = vst [vmem:[#allocation20_spill] sm:$0xff] %v4645_v32  ;;  %v2303_v37 = vmax.f32 %v4417_v47, 0.0  ;;  %v2304_v63 = vmax.f32 %v4421_v2, 0.0  ;;  %v2305_v48 = vmax.f32 %v4425_v4, 0.0  ;;  %v2306_v32 = vmax.f32 %v4429_v5, 0.0 }
 0x1e9   :  { %4835 = vst [vmem:[#allocation22_spill] sm:$0xff] %v4649_v56  ;;  %v2307_v52 = vmax.f32 %v4433_v40, 0.0  ;;  %v2308_v56 = vmax.f32 %v4437_v51, 0.0  ;;  %2364 = vst [vmem:[#allocation2] sm:$0xff] %v2300_v20  ;;  %v2309_v60 = vmax.f32 %v4441_v35, 0.0  ;;  %v2310_v44 = vmax.f32 %v4445_v17, 0.0 }
 0x1ea   :  { %v2311_v61 = vmax.f32 %v4449_v9, 0.0  ;;  %v2312_v22 = vmax.f32 %v4453_v13, 0.0  ;;  %2365 = vst [vmem:[#allocation2 + $0x8] sm:$0xff] %v2301_v12  ;;  %2366 = vst [vmem:[#allocation2 + $0x10] sm:$0xff] %v2302_v6  ;;  %v2313_v3 = vmax.f32 %v4457_v7, 0.0  ;;  %v2314_v47 = vmax.f32 %v4461_v11, 0.0 }
 0x1eb   :  { %2367 = vst [vmem:[#allocation2 + $0x18] sm:$0xff] %v2303_v37  ;;  %2368 = vst [vmem:[#allocation2 + $0x20] sm:$0xff] %v2304_v63  ;;  %v2315_v2 = vmax.f32 %v4465_v25, 0.0  ;;  %v2316_v4 = vmax.f32 %v4469_v33, 0.0  ;;  %v2317_v5 = vmax.f32 %v4473_v21, 0.0  ;;  %v2318_v40 = vmax.f32 %v4477_v28, 0.0 }
 0x1ec   :  { %2369 = vst [vmem:[#allocation2 + $0x28] sm:$0xff] %v2305_v48  ;;  %2370 = vst [vmem:[#allocation2 + $0x30] sm:$0xff] %v2306_v32  ;;  %v2319_v51 = vmax.f32 %v4481_v45, 0.0  ;;  %v2320_v35 = vmax.f32 %v4485_v16, 0.0  ;;  %v2321_v17 = vmax.f32 %v4489_v41, 0.0  ;;  %v2322_v9 = vmax.f32 %v4493_v10, 0.0 }
 0x1ed   :  { %2371 = vst [vmem:[#allocation2 + $0x38] sm:$0xff] %v2307_v52  ;;  %2372 = vst [vmem:[#allocation2 + $0x40] sm:$0xff] %v2308_v56  ;;  %v2323_v13 = vmax.f32 %v4497_v27, 0.0  ;;  %v2324_v7 = vmax.f32 %v4501_v36, 0.0  ;;  %v2325_v11 = vmax.f32 %v4505_v23, 0.0  ;;  %v2326_v25 = vmax.f32 %v4509_v31, 0.0 }
 0x1ee   :  { %2373 = vst [vmem:[#allocation2 + $0x48] sm:$0xff] %v2309_v60  ;;  %2374 = vst [vmem:[#allocation2 + $0x50] sm:$0xff] %v2310_v44  ;;  %v2327_v33 = vmax.f32 %v4513_v8, 0.0  ;;  %v2328_v21 = vmax.f32 %v4517_v18, 0.0  ;;  %v2329_v28 = vmax.f32 %v4521_v43, 0.0  ;;  %v2330_v45 = vmax.f32 %v4525_v46, 0.0 }
 0x1ef   :  { %2375 = vst [vmem:[#allocation2 + $0x58] sm:$0xff] %v2311_v61  ;;  %2376 = vst [vmem:[#allocation2 + $0x60] sm:$0xff] %v2312_v22  ;;  %v2331_v16 = vmax.f32 %v4529_v30, 0.0  ;;  %v2332_v41 = vmax.f32 %v4533_v38, 0.0  ;;  %v2333_v10 = vmax.f32 %v4537_v49, 0.0  ;;  %v2334_v27 = vmax.f32 %v4541_v50, 0.0 }
 0x1f0   :  { %2377 = vst [vmem:[#allocation2 + $0x68] sm:$0xff] %v2313_v3  ;;  %2378 = vst [vmem:[#allocation2 + $0x70] sm:$0xff] %v2314_v47  ;;  %v2335_v36 = vmax.f32 %v4545_v14, 0.0  ;;  %v2336_v23 = vmax.f32 %v4549_v19, 0.0  ;;  %v2337_v31 = vmax.f32 %v4553_v53, 0.0  ;;  %v2338_v8 = vmax.f32 %v4557_v54, 0.0 }
 0x1f1   :  { %2379 = vst [vmem:[#allocation2 + $0x78] sm:$0xff] %v2315_v2  ;;  %2380 = vst [vmem:[#allocation2 + $0x80] sm:$0xff] %v2316_v4  ;;  %v2339_v18 = vmax.f32 %v4561_v34, 0.0  ;;  %v2340_v43 = vmax.f32 %v4565_v39, 0.0  ;;  %v2341_v46 = vmax.f32 %v4569_v57, 0.0  ;;  %v2342_v30 = vmax.f32 %v4573_v58, 0.0 }
 0x1f2   :  { %2381 = vst [vmem:[#allocation2 + $0x88] sm:$0xff] %v2317_v5  ;;  %2382 = vst [vmem:[#allocation2 + $0x90] sm:$0xff] %v2318_v40  ;;  %v2343_v38 = vmax.f32 %v4577_v62, 0.0  ;;  %v2344_v49 = vmax.f32 %v4581_v29, 0.0  ;;  %v4836_v50 = vld [vmem:[#allocation12_spill] sm:$0xff]  ;;  %v4837_v19 = vld [vmem:[#allocation14_spill] sm:$0xff] }
 0x1f3   :  { %2383 = vst [vmem:[#allocation2 + $0x98] sm:$0xff] %v2319_v51  ;;  %2384 = vst [vmem:[#allocation2 + $0xa0] sm:$0xff] %v2320_v35  ;;  %v2345_v14 = vmax.f32 %v4836_v50, 0.0  ;;  %v2346_v53 = vmax.f32 %v4837_v19, 0.0  ;;  %v4838_v54 = vld [vmem:[#allocation11_spill] sm:$0xff]  ;;  %v4839_v39 = vld [vmem:[#allocation13_spill] sm:$0xff] }
 0x1f4   :  { %2385 = vst [vmem:[#allocation2 + $0xa8] sm:$0xff] %v2321_v17  ;;  %2386 = vst [vmem:[#allocation2 + $0xb0] sm:$0xff] %v2322_v9  ;;  %v2347_v34 = vmax.f32 %v4838_v54, 0.0  ;;  %v2348_v20 = vmax.f32 %v4839_v39, 0.0  ;;  %v4840_v57 = vld [vmem:[#allocation16_spill] sm:$0xff]  ;;  %v2350_v62 = vmax.f32 %v4605_v1, 0.0 }
 0x1f5   :  { %2387 = vst [vmem:[#allocation2 + $0xb8] sm:$0xff] %v2323_v13  ;;  %2388 = vst [vmem:[#allocation2 + $0xc0] sm:$0xff] %v2324_v7  ;;  %v2349_v58 = vmax.f32 %v4840_v57, 0.0  ;;  %v2351_v29 = vmax.f32 %v4609_v42, 0.0  ;;  %v2352_v6 = vmax.f32 %v4613_v0, 0.0  ;;  %v2353_v63 = vmax.f32 %v4617_v24, 0.0 }
 0x1f6   :  { %2389 = vst [vmem:[#allocation2 + $0xc8] sm:$0xff] %v2325_v11  ;;  %2390 = vst [vmem:[#allocation2 + $0xd0] sm:$0xff] %v2326_v25  ;;  %v2354_v32 = vmax.f32 %v4621_v26, 0.0  ;;  %v2355_v56 = vmax.f32 %v4625_v59, 0.0  ;;  %v2356_v12 = vmax.f32 %v4629_v15, 0.0  ;;  %v4841_v1 = vld [vmem:[#allocation18_spill] sm:$0xff] }
 0x1f7   :  { %2391 = vst [vmem:[#allocation2 + $0xd8] sm:$0xff] %v2327_v33  ;;  %2392 = vst [vmem:[#allocation2 + $0xe0] sm:$0xff] %v2328_v21  ;;  %v2357_v42 = vmax.f32 %v4841_v1, 0.0  ;;  %v4842_v37 = vld [vmem:[#allocation15_spill] sm:$0xff]  ;;  %v4843_v48 = vld [vmem:[#allocation17_spill] sm:$0xff]  ;;  %v2363_v59 = vmax.f32 %v4653_v55, 0.0 }
 0x1f8   :  { %2393 = vst [vmem:[#allocation2 + $0xe8] sm:$0xff] %v2329_v28  ;;  %2394 = vst [vmem:[#allocation2 + $0xf0] sm:$0xff] %v2330_v45  ;;  %v2358_v0 = vmax.f32 %v4842_v37, 0.0  ;;  %v2359_v52 = vmax.f32 %v4843_v48, 0.0  ;;  %v4844_v60 = vld [vmem:[#allocation20_spill] sm:$0xff]  ;;  %v4845_v24 = vld [vmem:[#allocation22_spill] sm:$0xff] }
 0x1f9   :  { %2395 = vst [vmem:[#allocation2 + $0xf8] sm:$0xff] %v2331_v16  ;;  %2396 = vst [vmem:[#allocation2 + $0x100] sm:$0xff] %v2332_v41  ;;  %v2360_v44 = vmax.f32 %v4844_v60, 0.0  ;;  %v2362_v26 = vmax.f32 %v4845_v24, 0.0 }
 0x1fa   :  { %2397 = vst [vmem:[#allocation2 + $0x108] sm:$0xff] %v2333_v10  ;;  %2398 = vst [vmem:[#allocation2 + $0x110] sm:$0xff] %v2334_v27 }
 0x1fb   :  { %2399 = vst [vmem:[#allocation2 + $0x118] sm:$0xff] %v2335_v36  ;;  %2400 = vst [vmem:[#allocation2 + $0x120] sm:$0xff] %v2336_v23 }
 0x1fc   :  { %2401 = vst [vmem:[#allocation2 + $0x128] sm:$0xff] %v2337_v31  ;;  %2402 = vst [vmem:[#allocation2 + $0x130] sm:$0xff] %v2338_v8 }
 0x1fd   :  { %2403 = vst [vmem:[#allocation2 + $0x138] sm:$0xff] %v2339_v18  ;;  %2404 = vst [vmem:[#allocation2 + $0x140] sm:$0xff] %v2340_v43 }
 0x1fe   :  { %2405 = vst [vmem:[#allocation2 + $0x148] sm:$0xff] %v2341_v46  ;;  %2406 = vst [vmem:[#allocation2 + $0x150] sm:$0xff] %v2342_v30 }
 0x1ff   :  { %2407 = vst [vmem:[#allocation2 + $0x158] sm:$0xff] %v2343_v38  ;;  %2408 = vst [vmem:[#allocation2 + $0x160] sm:$0xff] %v2344_v49 }
 0x200   :  { %2409 = vst [vmem:[#allocation2 + $0x168] sm:$0xff] %v2345_v14  ;;  %2410 = vst [vmem:[#allocation2 + $0x170] sm:$0xff] %v2346_v53 }
 0x201   :  { %2411 = vst [vmem:[#allocation2 + $0x178] sm:$0xff] %v2347_v34  ;;  %2412 = vst [vmem:[#allocation2 + $0x180] sm:$0xff] %v2348_v20 }
 0x202   :  { %2413 = vst [vmem:[#allocation2 + $0x188] sm:$0xff] %v2349_v58  ;;  %2414 = vst [vmem:[#allocation2 + $0x190] sm:$0xff] %v2350_v62 }
 0x203   :  { %2415 = vst [vmem:[#allocation2 + $0x198] sm:$0xff] %v2351_v29  ;;  %2416 = vst [vmem:[#allocation2 + $0x1a0] sm:$0xff] %v2352_v6 }
 0x204   :  { %2417 = vst [vmem:[#allocation2 + $0x1a8] sm:$0xff] %v2353_v63  ;;  %2418 = vst [vmem:[#allocation2 + $0x1b0] sm:$0xff] %v2354_v32 }
 0x205   :  { %2419 = vst [vmem:[#allocation2 + $0x1b8] sm:$0xff] %v2355_v56  ;;  %2420 = vst [vmem:[#allocation2 + $0x1c0] sm:$0xff] %v2356_v12 }
 0x206   :  { %2421 = vst [vmem:[#allocation2 + $0x1c8] sm:$0xff] %v2357_v42  ;;  %2422 = vst [vmem:[#allocation2 + $0x1d0] sm:$0xff] %v2358_v0 }
 0x207   :  { %2423 = vst [vmem:[#allocation2 + $0x1d8] sm:$0xff] %v2359_v52  ;;  %2424 = vst [vmem:[#allocation2 + $0x1e0] sm:$0xff] %v2360_v44 }
 0x208   :  { %2426 = vst [vmem:[#allocation2 + $0x1f0] sm:$0xff] %v2362_v26  ;;  %2427 = vst [vmem:[#allocation2 + $0x1f8] sm:$0xff] %v2363_v59 }
 0x209   :  { %3317 = shalt.err (!%p3314_p4)
}
 0x20a   :  { %s3318_s30 = scalar_lea.hbm %s4741_s4, 8192 }
 0x20b   :  { %p3319_p5 = scmp.ne.s32.totalorder %s4741_s4, %s3318_s30  ;;  %p3322_p6 = scmp.lt.u32.totalorder %s3318_s30, %s4741_s4 }
 0x20d   :  { %p3324_p7 = pnand %p3322_p6, %p3319_p5 }
 0x20f   :  { %3327 = shalt.err (!%p3324_p7)
}
 0x210   :  { %s3331_s8 = smov 128   ;;  %s3332_s9 = smov 8  }
 0x211   :  { %2439 = dma.vmem_to_hbm [thread:$0]  %s4716_s3, 8192, %s4741_s4, [#allocation3], %s3331_s8, %s3331_s8, %s3332_s9  }
 0x212   :  { %3328 = dma.done.wait [#allocation3], 8192  }
 0x213   :  { %3329 = vsyncadd [#allocation3], 4294959104 }
 0x214   :  { %2443 = vsyncpa [#allocation3], 1 }

</bundles_post_ra>
